<compile_context>
chip_gen: v7x
topology: tpu7x:2x2x1
jax: 0.10.0
libtpu: 0.0.40
codegen_flags: <defaults>
</compile_context>

<pallas_src>
from typing import NamedTuple

import jax
import jax.numpy as jnp
from jax.experimental import pallas as pl
from jax.experimental.pallas import tpu as pltpu

HIDDEN = 512
BN_EPS = 1e-5
LANE = 128


def _round_up(n, m):
    return (n + m - 1) // m * m


def _bn_relu(h, gamma, beta):
    """Training-mode BatchNorm1d (biased batch variance) fused with ReLU.

    Two-pass stats (mean, then E[(h-mean)^2]) avoid catastrophic cancellation;
    the affine is fused into a single scale so full-(B,F) elementwise work is
    just: d = h - mean, d*d (for var), d*scale, +beta.  The rsqrt/gamma math
    happens on (1,F) vectors only.
    """
    inv_b = 1.0 / h.shape[0]
    mean = jnp.sum(h, axis=0, keepdims=True) * inv_b
    d = h - mean
    var = jnp.sum(d * d, axis=0, keepdims=True) * inv_b
    scale = gamma * jax.lax.rsqrt(var + BN_EPS)          # (1, F) only
    return jnp.maximum(d * scale + beta, 0.0)


def make_actor_kernel(max_action: float, hidden: int, n_pad: int):
    def actor_kernel(x_ref, w1_ref, w2_ref, w3_ref, vec_ref, o_ref):
        # Packed per-feature parameters (single small f32 operand):
        #   row 0: gamma1, row 1: beta1, row 2: gamma2, row 3: beta2,
        #   row 4: fc3 bias (lane-padded).
        g1 = vec_ref[0:1, :hidden]
        be1 = vec_ref[1:2, :hidden]
        g2 = vec_ref[2:3, :hidden]
        be2 = vec_ref[3:4, :hidden]
        b3 = vec_ref[4:5, :n_pad]

        # fc1 (bf16 x bf16 -> f32 acc) -> bn1 -> relu.
        # fc1/fc2 biases are intentionally absent: BN mean-subtraction cancels
        # them exactly, so they are not loaded or added.
        h = jnp.dot(x_ref[...], w1_ref[...], preferred_element_type=jnp.float32)
        h = _bn_relu(h, g1, be1)

        # fc2 -> bn2 -> relu
        h = jnp.dot(h.astype(jnp.bfloat16), w2_ref[...],
                    preferred_element_type=jnp.float32)
        h = _bn_relu(h, g2, be2)

        # fc3 -> tanh -> * max_action   (output lane-padded to 128n)
        z = jnp.dot(h.astype(jnp.bfloat16), w3_ref[...],
                    preferred_element_type=jnp.float32) + b3
        o_ref[...] = jnp.tanh(z) * max_action

    return actor_kernel


class PreparedActorParams(NamedTuple):
    w1: jax.Array      # (k_pad, HIDDEN)  bf16
    w2: jax.Array      # (HIDDEN, HIDDEN) bf16
    w3: jax.Array      # (HIDDEN, n_pad)  bf16
    vecs: jax.Array    # (5, pack_w)      f32  (g1, be1, g2, be2, b3)
    state_dim: int
    action_dim: int
    k_pad: int
    n_pad: int
    pack_w: int


def prepare_actor_params(params, state_dim, action_dim):
    """One-time parameter prep: pad + bf16 cast + micro-operand packing.

    Done once (outside the per-step loop) so per-call HBM traffic is just the
    bf16 weights, x and the output.  b1/b2 are dropped (BN-cancelled).
    """
    (w1, b1, g1, be1, w2, b2, g2, be2, w3, b3) = params
    del b1, b2  # exactly cancelled by training-mode BatchNorm mean subtraction

    k_pad = _round_up(state_dim, LANE)
    n_pad = _round_up(action_dim, LANE)
    pack_w = max(HIDDEN, n_pad)

    w1_p = jnp.pad(w1, ((0, k_pad - state_dim), (0, 0))).astype(jnp.bfloat16)
    w2_p = w2.astype(jnp.bfloat16)
    w3_p = jnp.pad(w3, ((0, 0), (0, n_pad - action_dim))).astype(jnp.bfloat16)

    def row(v):
        v = v.reshape(1, -1).astype(jnp.float32)
        return jnp.pad(v, ((0, 0), (0, pack_w - v.shape[1])))

    vecs = jnp.concatenate([row(g1), row(be1), row(g2), row(be2), row(b3)], 0)

    return PreparedActorParams(w1_p, w2_p, w3_p, vecs,
                               state_dim, action_dim, k_pad, n_pad, pack_w)


def _vmem_limit_bytes(batch, k_pad, n_pad, pack_w):
    # Inputs + output + a few live (B, HIDDEN) f32 intermediates, 2x headroom,
    # floored at 32 MiB.  Keeps larger batches from tripping the default
    # scoped-VMEM limit (hit first on v7x, 64 MiB physical).
    used = (batch * k_pad * 2
            + k_pad * HIDDEN * 2
            + HIDDEN * HIDDEN * 2
            + HIDDEN * n_pad * 2
            + 8 * pack_w * 4
            + batch * n_pad * 4
            + 4 * batch * HIDDEN * 4)
    return int(max(2 * used, 32 * 1024 * 1024))


def actor_forward(x, prepped: PreparedActorParams, max_action):
    batch, state_dim = x.shape
    assert state_dim == prepped.state_dim

    # Lane-dense input load; zero columns contribute nothing to the matmul.
    # (The batch axis is NOT padded: BN statistics run over real rows only.)
    x_p = jnp.pad(x, ((0, 0), (0, prepped.k_pad - state_dim))).astype(jnp.bfloat16)

    vmem = pl.BlockSpec(memory_space=pltpu.MemorySpace.VMEM)
    out_padded = pl.pallas_call(
        make_actor_kernel(float(max_action), HIDDEN, prepped.n_pad),
        out_shape=jax.ShapeDtypeStruct((batch, prepped.n_pad), jnp.float32),
        in_specs=[vmem] * 5,
        out_specs=vmem,
        compiler_params=pltpu.CompilerParams(
            vmem_limit_bytes=_vmem_limit_bytes(batch, prepped.k_pad,
                                               prepped.n_pad, prepped.pack_w),
            # Allow XLA to fuse the per-call pad/cast producer of x into the
            # call instead of materializing x_p in HBM.
            allow_input_fusion=[True, False, False, False, False],
        ),
    )(x_p, prepped.w1, prepped.w2, prepped.w3, prepped.vecs)
    return out_padded[:, :prepped.action_dim]


def init_actor_params(key, state_dim, action_dim):
    """Deterministic init mimicking nn.Linear defaults (U(-1/sqrt(fan_in), +))."""
    def linear(key, fan_in, fan_out):
        kw, kb = jax.random.split(key)
        bound = 1.0 / jnp.sqrt(fan_in)
        w = jax.random.uniform(kw, (fan_in, fan_out), jnp.float32, -bound, bound)
        b = jax.random.uniform(kb, (1, fan_out), jnp.float32, -bound, bound)
        return w, b

    k1, k2, k3 = jax.random.split(key, 3)
    w1, b1 = linear(k1, state_dim, HIDDEN)
    w2, b2 = linear(k2, HIDDEN, HIDDEN)
    w3, b3 = linear(k3, HIDDEN, action_dim)
    g1 = jnp.ones((1, HIDDEN), jnp.float32)
    be1 = jnp.zeros((1, HIDDEN), jnp.float32)
    g2 = jnp.ones((1, HIDDEN), jnp.float32)
    be2 = jnp.zeros((1, HIDDEN), jnp.float32)
    return (w1, b1, g1, be1, w2, b2, g2, be2, w3, b3)


def actor_reference(x, params, max_action):
    """Pure-JAX reference faithful to the PyTorch module (biases included,
    standard BN form), with the same bf16-operand / f32-accumulate matmuls.
    Differences vs the kernel (bias-before-BN cancellation, fused affine) are
    mathematically exact; residual diffs are bf16/f32 rounding only."""
    (w1, b1, g1, be1, w2, b2, g2, be2, w3, b3) = params

    def bn(h, gamma, beta):
        mean = jnp.mean(h, axis=0, keepdims=True)
        var = jnp.mean((h - mean) ** 2, axis=0, keepdims=True)
        return (h - mean) / jnp.sqrt(var + BN_EPS) * gamma + beta

    h = jnp.dot(x.astype(jnp.bfloat16), w1.astype(jnp.bfloat16),
                preferred_element_type=jnp.float32) + b1
    h = jnp.maximum(bn(h, g1, be1), 0.0)
    h = jnp.dot(h.astype(jnp.bfloat16), w2.astype(jnp.bfloat16),
                preferred_element_type=jnp.float32) + b2
    h = jnp.maximum(bn(h, g2, be2), 0.0)
    z = jnp.dot(h.astype(jnp.bfloat16), w3.astype(jnp.bfloat16),
                preferred_element_type=jnp.float32) + b3
    return jnp.tanh(z) * max_action


if __name__ == "__main__":
    key = jax.random.PRNGKey(0)
    kx, kp = jax.random.split(key)

    # Small shapes; batch is a multiple of 16 so bf16-packed vregs are full.
    batch = 16
    state_dim = 32
    action_dim = 6
    max_action = 2.0

    x = jax.random.normal(kx, (batch, state_dim), jnp.float32)
    params = init_actor_params(kp, state_dim, action_dim)
    prepped = prepare_actor_params(params, state_dim, action_dim)

    out = actor_forward(x, prepped, max_action)
    out = jax.block_until_ready(out)

    ref = actor_reference(x, params, max_action)
    assert out.shape == (batch, action_dim)
    # 2e-2 tolerance reflects the intentional bf16 matmul-operand path
    # (expected accuracy, not a bug).
    assert jnp.allclose(out, ref, atol=2e-2, rtol=2e-2), "mismatch vs reference"

    print("KERNEL_OK")
</pallas_src>

<mosaic_0001>
module attributes {stable_mosaic.version = 11 : i64} {
  func.func @actor_kernel(%arg0: memref<16x128xbf16, #tpu.memory_space<vmem>>, %arg1: memref<128x512xbf16, #tpu.memory_space<vmem>>, %arg2: memref<512x512xbf16, #tpu.memory_space<vmem>>, %arg3: memref<512x128xbf16, #tpu.memory_space<vmem>>, %arg4: memref<5x512xf32, #tpu.memory_space<vmem>>, %arg5: memref<16x128xf32, #tpu.memory_space<vmem>>) attributes {dimension_semantics = [], scalar_prefetch = 0 : i64, scratch_operands = 0 : i64, tpu.core_type = #tpu.core_type<tc>} {
    %c0 = arith.constant 0 : index
    %c0_0 = arith.constant 0 : index
    %0 = vector.load %arg4[%c0, %c0_0] : memref<5x512xf32, #tpu.memory_space<vmem>>, vector<1x512xf32>
    %c1 = arith.constant 1 : index
    %c0_1 = arith.constant 0 : index
    %1 = vector.load %arg4[%c1, %c0_1] : memref<5x512xf32, #tpu.memory_space<vmem>>, vector<1x512xf32>
    %c2 = arith.constant 2 : index
    %c0_2 = arith.constant 0 : index
    %2 = vector.load %arg4[%c2, %c0_2] : memref<5x512xf32, #tpu.memory_space<vmem>>, vector<1x512xf32>
    %c3 = arith.constant 3 : index
    %c0_3 = arith.constant 0 : index
    %3 = vector.load %arg4[%c3, %c0_3] : memref<5x512xf32, #tpu.memory_space<vmem>>, vector<1x512xf32>
    %c4 = arith.constant 4 : index
    %c0_4 = arith.constant 0 : index
    %4 = vector.load %arg4[%c4, %c0_4] : memref<5x512xf32, #tpu.memory_space<vmem>>, vector<1x128xf32>
    %c0_5 = arith.constant 0 : index
    %c0_6 = arith.constant 0 : index
    %5 = vector.load %arg0[%c0_5, %c0_6] : memref<16x128xbf16, #tpu.memory_space<vmem>>, vector<16x128xbf16>
    %c0_7 = arith.constant 0 : index
    %c0_8 = arith.constant 0 : index
    %6 = vector.load %arg1[%c0_7, %c0_8] : memref<128x512xbf16, #tpu.memory_space<vmem>>, vector<128x512xbf16>
    %cst = arith.constant dense<0.000000e+00> : vector<16x512xf32>
    %7 = tpu.matmul %5, %6, %cst {dimension_numbers = #tpu.dot_dimension_numbers<[1], [0], [0], [1], [0, 0, 1, 1], [], []>} : vector<16x128xbf16>, vector<128x512xbf16>, vector<16x512xf32> -> vector<16x512xf32>
    %cst_9 = arith.constant dense<0.000000e+00> : vector<512xf32>
    %8 = vector.multi_reduction <add>, %7, %cst_9 [0] : vector<16x512xf32> to vector<512xf32>
    %9 = vector.shape_cast %8 : vector<512xf32> to vector<1x512xf32>
    %cst_10 = arith.constant 6.250000e-02 : f32
    %10 = vector.broadcast %cst_10 : f32 to vector<1x512xf32>
    %11 = arith.mulf %9, %10 : vector<1x512xf32>
    %12 = vector.broadcast %11 : vector<1x512xf32> to vector<16x512xf32>
    %13 = arith.subf %7, %12 : vector<16x512xf32>
    %14 = arith.mulf %13, %13 : vector<16x512xf32>
    %cst_11 = arith.constant dense<0.000000e+00> : vector<512xf32>
    %15 = vector.multi_reduction <add>, %14, %cst_11 [0] : vector<16x512xf32> to vector<512xf32>
    %16 = vector.shape_cast %15 : vector<512xf32> to vector<1x512xf32>
    %cst_12 = arith.constant 6.250000e-02 : f32
    %17 = vector.broadcast %cst_12 : f32 to vector<1x512xf32>
    %18 = arith.mulf %16, %17 : vector<1x512xf32>
    %cst_13 = arith.constant 9.99999974E-6 : f32
    %19 = vector.broadcast %cst_13 : f32 to vector<1x512xf32>
    %20 = arith.addf %18, %19 : vector<1x512xf32>
    %21 = math.rsqrt %20 : vector<1x512xf32>
    %22 = arith.mulf %0, %21 : vector<1x512xf32>
    %23 = vector.broadcast %22 : vector<1x512xf32> to vector<16x512xf32>
    %24 = arith.mulf %13, %23 : vector<16x512xf32>
    %25 = vector.broadcast %1 : vector<1x512xf32> to vector<16x512xf32>
    %26 = arith.addf %24, %25 : vector<16x512xf32>
    %cst_14 = arith.constant 0.000000e+00 : f32
    %27 = vector.broadcast %cst_14 : f32 to vector<16x512xf32>
    %28 = arith.maximumf %26, %27 : vector<16x512xf32>
    %29 = arith.truncf %28 : vector<16x512xf32> to vector<16x512xbf16>
    %c0_15 = arith.constant 0 : index
    %c0_16 = arith.constant 0 : index
    %30 = vector.load %arg2[%c0_15, %c0_16] : memref<512x512xbf16, #tpu.memory_space<vmem>>, vector<512x512xbf16>
    %cst_17 = arith.constant dense<0.000000e+00> : vector<16x512xf32>
    %31 = tpu.matmul %29, %30, %cst_17 {dimension_numbers = #tpu.dot_dimension_numbers<[1], [0], [0], [1], [0, 0, 1, 1], [], []>} : vector<16x512xbf16>, vector<512x512xbf16>, vector<16x512xf32> -> vector<16x512xf32>
    %cst_18 = arith.constant dense<0.000000e+00> : vector<512xf32>
    %32 = vector.multi_reduction <add>, %31, %cst_18 [0] : vector<16x512xf32> to vector<512xf32>
    %33 = vector.shape_cast %32 : vector<512xf32> to vector<1x512xf32>
    %cst_19 = arith.constant 6.250000e-02 : f32
    %34 = vector.broadcast %cst_19 : f32 to vector<1x512xf32>
    %35 = arith.mulf %33, %34 : vector<1x512xf32>
    %36 = vector.broadcast %35 : vector<1x512xf32> to vector<16x512xf32>
    %37 = arith.subf %31, %36 : vector<16x512xf32>
    %38 = arith.mulf %37, %37 : vector<16x512xf32>
    %cst_20 = arith.constant dense<0.000000e+00> : vector<512xf32>
    %39 = vector.multi_reduction <add>, %38, %cst_20 [0] : vector<16x512xf32> to vector<512xf32>
    %40 = vector.shape_cast %39 : vector<512xf32> to vector<1x512xf32>
    %cst_21 = arith.constant 6.250000e-02 : f32
    %41 = vector.broadcast %cst_21 : f32 to vector<1x512xf32>
    %42 = arith.mulf %40, %41 : vector<1x512xf32>
    %cst_22 = arith.constant 9.99999974E-6 : f32
    %43 = vector.broadcast %cst_22 : f32 to vector<1x512xf32>
    %44 = arith.addf %42, %43 : vector<1x512xf32>
    %45 = math.rsqrt %44 : vector<1x512xf32>
    %46 = arith.mulf %2, %45 : vector<1x512xf32>
    %47 = vector.broadcast %46 : vector<1x512xf32> to vector<16x512xf32>
    %48 = arith.mulf %37, %47 : vector<16x512xf32>
    %49 = vector.broadcast %3 : vector<1x512xf32> to vector<16x512xf32>
    %50 = arith.addf %48, %49 : vector<16x512xf32>
    %cst_23 = arith.constant 0.000000e+00 : f32
    %51 = vector.broadcast %cst_23 : f32 to vector<16x512xf32>
    %52 = arith.maximumf %50, %51 : vector<16x512xf32>
    %53 = arith.truncf %52 : vector<16x512xf32> to vector<16x512xbf16>
    %c0_24 = arith.constant 0 : index
    %c0_25 = arith.constant 0 : index
    %54 = vector.load %arg3[%c0_24, %c0_25] : memref<512x128xbf16, #tpu.memory_space<vmem>>, vector<512x128xbf16>
    %cst_26 = arith.constant dense<0.000000e+00> : vector<16x128xf32>
    %55 = tpu.matmul %53, %54, %cst_26 {dimension_numbers = #tpu.dot_dimension_numbers<[1], [0], [0], [1], [0, 0, 1, 1], [], []>} : vector<16x512xbf16>, vector<512x128xbf16>, vector<16x128xf32> -> vector<16x128xf32>
    %56 = vector.broadcast %4 : vector<1x128xf32> to vector<16x128xf32>
    %57 = arith.addf %55, %56 : vector<16x128xf32>
    %58 = math.tanh %57 : vector<16x128xf32>
    %cst_27 = arith.constant 2.000000e+00 : f32
    %59 = vector.broadcast %cst_27 : f32 to vector<16x128xf32>
    %60 = arith.mulf %58, %59 : vector<16x128xf32>
    %c0_28 = arith.constant 0 : index
    %c0_29 = arith.constant 0 : index
    %61 = vector.load %arg5[%c0_28, %c0_29] : memref<16x128xf32, #tpu.memory_space<vmem>>, vector<16x128xf32>
    tpu.vector_store %arg5[%c0_28, %c0_29], %60 {strides = array<i32>} : memref<16x128xf32, #tpu.memory_space<vmem>>, vector<16x128xf32>,
    return
  }
}

</mosaic_0001>

<bundles_post_ra>
// kernel: tpu_custom_call.1
= control target key start
LH: loop header
LB: loop body
LE: loop exit
PB: predicated region body
PF: predicated region fallthrough
CT: control target
= control target key end

     0   :  { %10 = vsyncpa [#allocation3], 0  ;;  %s2991_s0 = inlined_call_operand.hbm [shape: bf16[16,128], index: 0, kind: input, shape index: {}]   ;;  %s2992_s1 = inlined_call_operand.hbm [shape: bf16[128,512], index: 1, kind: input, shape index: {}]   ;;  %s2993_s2 = inlined_call_operand.hbm [shape: bf16[512,512], index: 2, kind: input, shape index: {}]   ;;  %s2994_s3 = inlined_call_operand.hbm [shape: bf16[512,128], index: 3, kind: input, shape index: {}]   ;;  %s2995_s4 = inlined_call_operand.hbm [shape: f32[5,512], index: 4, kind: input, shape index: {}]   ;;  %s2996_s5 = inlined_call_operand.hbm [shape: f32[16,128], index: 5, kind: output, shape index: {}]  }
   0x1   :  { %11 = vsyncpa [#allocation6], 0 }
   0x2   :  { %12 = vsyncpa [#allocation9], 0 }
   0x3   :  { %13 = vsyncpa [#allocation4], 0  ;;  %s2753_s18 = smov [#allocation5]   ;;  %s2613_s22 = scalar_lea.hbm %s2992_s1, 4096 }
   0x4   :  { %s31_s19 = sshll.u32 %s2753_s18, 4  ;;  %p2614_p0 = scmp.ne.s32.totalorder %s2992_s1, %s2613_s22  ;;  %s32_s19 = int_to_ptr.vmem [resolvable:$true] %s31_s19 }
   0x5   :  { %p2617_p1 = scmp.lt.u32.totalorder %s2613_s22, %s2992_s1 }
   0x7   :  { %p2619_p2 = pnand %p2617_p1, %p2614_p0 }
   0x9   :  { %2622 = shalt.err (!%p2619_p2)
}
   0xa   :  { %s2623_s27 = scalar_lea.vmem %s32_s19, 4096  ;;  %p2628_p4 = scmp.lt.s32.totalorder %s32_s19, %s32_s19 }
   0xb   :  { %p2624_p3 = scmp.ne.s32.totalorder %s32_s19, %s2623_s27  ;;  %p2629_p5 = scmp.lt.s32.totalorder %s2623_s27, %s2623_s27 }
   0xd   :  { %p2630_p6 = por %p2629_p5, %p2628_p4 }
   0xf   :  { %p2631_p7 = pnand %p2630_p6, %p2624_p3 }
  0x11   :  { %2634 = shalt.err (!%p2631_p7)
}
  0x12   :  { %s2754_s28 = smov 256   ;;  %s2755_s29 = smov 16  }
  0x13   :  { %37 = dma.hbm_to_vmem [thread:$0]  %s2992_s1, 4096, %s32_s19, [#allocation6], %s2754_s28, %s2754_s28, %s2755_s29  }
  0x14   :  { %s2756_s7 = smov [#allocation8]   ;;  %s2757_s9 = smov [#allocation2]  }
  0x15   :  { %s55_s8 = sshll.u32 %s2756_s7, 4  ;;  %s19_s10 = sshll.u32 %s2757_s9, 4  ;;  %s56_s8 = int_to_ptr.vmem [resolvable:$true] %s55_s8  ;;  %s20_s10 = int_to_ptr.vmem [resolvable:$true] %s19_s10 }
  0x16   :  { %s2635_s13 = scalar_lea.hbm %s2994_s3, 4096 }
  0x17   :  { %p2636_p8 = scmp.ne.s32.totalorder %s2994_s3, %s2635_s13  ;;  %p2639_p9 = scmp.lt.u32.totalorder %s2635_s13, %s2994_s3 }
  0x19   :  { %p2641_p10 = pnand %p2639_p9, %p2636_p8 }
  0x1b   :  { %2644 = shalt.err (!%p2641_p10)
}
  0x1c   :  { %s2645_s1 = scalar_lea.vmem %s56_s8, 4096  ;;  %p2650_p12 = scmp.lt.s32.totalorder %s56_s8, %s56_s8 }
  0x1d   :  { %p2646_p11 = scmp.ne.s32.totalorder %s56_s8, %s2645_s1  ;;  %p2651_p13 = scmp.lt.s32.totalorder %s2645_s1, %s2645_s1 }
  0x1f   :  { %p2652_p0 = por %p2651_p13, %p2650_p12 }
  0x21   :  { %p2653_p1 = pnand %p2652_p0, %p2646_p11 }
  0x23   :  { %2656 = shalt.err (!%p2653_p1)
}
  0x24   :  { %s2758_s18 = smov 64   ;;  %s2759_s19 = smov 4  }
  0x25   :  { %61 = dma.hbm_to_vmem [thread:$0]  %s2994_s3, 4096, %s56_s8, [#allocation9], %s2758_s18, %s2758_s18, %s2759_s19  }
  0x26   :  { %s2657_s24 = scalar_lea.hbm %s2991_s0, 128 }
  0x27   :  { %p2658_p2 = scmp.ne.s32.totalorder %s2991_s0, %s2657_s24  ;;  %p2661_p3 = scmp.lt.u32.totalorder %s2657_s24, %s2991_s0 }
  0x29   :  { %p2663_p4 = pnand %p2661_p3, %p2658_p2 }
  0x2b   :  { %2666 = shalt.err (!%p2663_p4)
}
  0x2c   :  { %s2667_s6 = scalar_lea.vmem %s20_s10, 128  ;;  %p2672_p6 = scmp.lt.s32.totalorder %s20_s10, %s20_s10 }
  0x2d   :  { %p2668_p5 = scmp.ne.s32.totalorder %s20_s10, %s2667_s6  ;;  %p2673_p7 = scmp.lt.s32.totalorder %s2667_s6, %s2667_s6 }
  0x2f   :  { %p2674_p8 = por %p2673_p7, %p2672_p6 }
  0x31   :  { %p2675_p9 = pnand %p2674_p8, %p2668_p5 }
  0x33   :  { %2678 = shalt.err (!%p2675_p9)
}
  0x34   :  { %25 = dma.hbm_to_vmem [thread:$0]  %s2991_s0, 128, %s20_s10, [#allocation3], %s2758_s18, %s2758_s18, %s2759_s19  }
  0x35   :  { %s2760_s8 = smov [#allocation7]   ;;  %s2761_s11 = smov [#allocation10]  }
  0x36   :  { %s43_s9 = sshll.u32 %s2760_s8, 4  ;;  %s68_s12 = sshll.u32 %s2761_s11, 4  ;;  %s44_s9 = int_to_ptr.vmem [resolvable:$true] %s43_s9  ;;  %s69_s12 = int_to_ptr.vmem [resolvable:$true] %s68_s12 }
  0x37   :  { %s2679_s15 = scalar_lea.hbm %s2993_s2, 16384 }
  0x38   :  { %p2680_p10 = scmp.ne.s32.totalorder %s2993_s2, %s2679_s15  ;;  %p2683_p11 = scmp.lt.u32.totalorder %s2679_s15, %s2993_s2 }
  0x3a   :  { %p2685_p12 = pnand %p2683_p11, %p2680_p10 }
  0x3c   :  { %2688 = shalt.err (!%p2685_p12)
}
  0x3d   :  { %s2689_s0 = scalar_lea.vmem %s44_s9, 16384  ;;  %p2694_p0 = scmp.lt.s32.totalorder %s44_s9, %s44_s9 }
  0x3e   :  { %p2690_p13 = scmp.ne.s32.totalorder %s44_s9, %s2689_s0  ;;  %p2695_p1 = scmp.lt.s32.totalorder %s2689_s0, %s2689_s0 }
  0x40   :  { %p2696_p2 = por %p2695_p1, %p2694_p0 }
  0x42   :  { %p2697_p3 = pnand %p2696_p2, %p2690_p13 }
  0x44   :  { %2700 = shalt.err (!%p2697_p3)
}
  0x45   :  { %49 = dma.hbm_to_vmem [thread:$0]  %s2993_s2, 16384, %s44_s9, [#allocation6], %s2754_s28, %s2754_s28, %s2755_s29  }
  0x46   :  { %s2701_s22 = scalar_lea.hbm %s2995_s4, 512 }
  0x47   :  { %p2702_p4 = scmp.ne.s32.totalorder %s2995_s4, %s2701_s22  ;;  %p2705_p5 = scmp.lt.u32.totalorder %s2701_s22, %s2995_s4 }
  0x49   :  { %p2707_p6 = pnand %p2705_p5, %p2702_p4 }
  0x4b   :  { %2710 = shalt.err (!%p2707_p6)
}
  0x4c   :  { %s2711_s27 = scalar_lea.vmem %s69_s12, 512  ;;  %p2716_p8 = scmp.lt.s32.totalorder %s69_s12, %s69_s12 }
  0x4d   :  { %p2712_p7 = scmp.ne.s32.totalorder %s69_s12, %s2711_s27  ;;  %p2717_p9 = scmp.lt.s32.totalorder %s2711_s27, %s2711_s27 }
  0x4f   :  { %p2718_p10 = por %p2717_p9, %p2716_p8 }
  0x51   :  { %p2719_p11 = pnand %p2718_p10, %p2712_p7 }
  0x53   :  { %2722 = shalt.err (!%p2719_p11)
}
  0x54   :  { %71 = dma.hbm_to_vmem [thread:$0]  %s2995_s4, 512, %s69_s12, [#allocation9]  }
  0x55   :  { %2745 = dma.done.wait [#allocation3], 128  }
  0x56   :  { %2746 = vsyncadd [#allocation3], 4294967168 }
  0x57   :  { %2747 = dma.done.wait [#allocation6], 20480  }
  0x58   :  { %2748 = vsyncadd [#allocation6], 4294946816 }
  0x59   :  { %2749 = dma.done.wait [#allocation9], 4608  }
  0x5a   :  { %2750 = vsyncadd [#allocation9], 4294962688  ;;  %v2762_v0 = vmov 0   ;;  %v2320_v1 = vld [vmem:[#allocation5 + $0x4] ss:$16 sps:$4 sm:$0xff]   ;;  %v2368_v33 = vld [vmem:[#allocation2] sm:$0xff]  }
  0x5b   :  { %328 = vmatprep.mubr.bf16.mxu0 %v2762_v0  ;;  %371 = vmatprep.mubr.bf16.mxu1 %v2762_v0  ;;  %v2322_v2 = vld [vmem:[#allocation5 + $0xc] ss:$16 sps:$4 sm:$0xff]   ;;  %v2324_v3 = vld [vmem:[#allocation5] ss:$16 sps:$4 sm:$0xff]   ;;  %v2325_v4 = vld [vmem:[#allocation5 + $0x8] ss:$16 sps:$4 sm:$0xff]  }
  0x5c   :  { %296 = vmatprep.subr.bf16.mxu0 %v2320_v1  ;;  %339 = vmatprep.subr.bf16.mxu1 %v2322_v2  ;;  %v2326_v5 = vld [vmem:[#allocation5 + $0x24] ss:$16 sps:$4 sm:$0xff]   ;;  %v2328_v6 = vld [vmem:[#allocation5 + $0x2c] ss:$16 sps:$4 sm:$0xff]   ;;  %v2330_v7 = vld [vmem:[#allocation5 + $0x20] ss:$16 sps:$4 sm:$0xff]  }
  0x5d   :  { %297 = vmatpush1.bf16.msra.mxu0 %v2324_v3  ;;  %340 = vmatpush1.bf16.msra.mxu1 %v2325_v4  ;;  %v2331_v8 = vld [vmem:[#allocation5 + $0x28] ss:$16 sps:$4 sm:$0xff]   ;;  %v2332_v9 = vld [vmem:[#allocation5 + $0x44] ss:$16 sps:$4 sm:$0xff]   ;;  %v2334_v10 = vld [vmem:[#allocation5 + $0x4c] ss:$16 sps:$4 sm:$0xff]  }
  0x5e   :  { %298 = vmatprep.subr.bf16.mxu0 %v2326_v5  ;;  %341 = vmatprep.subr.bf16.mxu1 %v2328_v6  ;;  %v2336_v11 = vld [vmem:[#allocation5 + $0x40] ss:$16 sps:$4 sm:$0xff]   ;;  %v2337_v12 = vld [vmem:[#allocation5 + $0x48] ss:$16 sps:$4 sm:$0xff]   ;;  %v2338_v13 = vld [vmem:[#allocation5 + $0x64] ss:$16 sps:$4 sm:$0xff]  }
  0x5f   :  { %v2340_v14 = vld [vmem:[#allocation5 + $0x6c] ss:$16 sps:$4 sm:$0xff]   ;;  %v2342_v15 = vld [vmem:[#allocation5 + $0x60] ss:$16 sps:$4 sm:$0xff]   ;;  %v2343_v16 = vld [vmem:[#allocation5 + $0x68] ss:$16 sps:$4 sm:$0xff]  }
  0x60   :  { %v2344_v17 = vld [vmem:[#allocation5 + $0x84] ss:$16 sps:$4 sm:$0xff]   ;;  %v2346_v18 = vld [vmem:[#allocation5 + $0x8c] ss:$16 sps:$4 sm:$0xff]   ;;  %v2348_v19 = vld [vmem:[#allocation5 + $0x80] ss:$16 sps:$4 sm:$0xff]  }
  0x61   :  { %299 = vmatpush1.bf16.msra.mxu0 %v2330_v7  ;;  %342 = vmatpush1.bf16.msra.mxu1 %v2331_v8  ;;  %v2349_v20 = vld [vmem:[#allocation5 + $0x88] ss:$16 sps:$4 sm:$0xff]   ;;  %v2350_v21 = vld [vmem:[#allocation5 + $0xa4] ss:$16 sps:$4 sm:$0xff]   ;;  %v2352_v22 = vld [vmem:[#allocation5 + $0xac] ss:$16 sps:$4 sm:$0xff]  }
  0x62   :  { %300 = vmatprep.subr.bf16.mxu0 %v2332_v9  ;;  %343 = vmatprep.subr.bf16.mxu1 %v2334_v10  ;;  %v2354_v23 = vld [vmem:[#allocation5 + $0xa0] ss:$16 sps:$4 sm:$0xff]   ;;  %v2355_v24 = vld [vmem:[#allocation5 + $0xa8] ss:$16 sps:$4 sm:$0xff]   ;;  %v2356_v25 = vld [vmem:[#allocation5 + $0xc4] ss:$16 sps:$4 sm:$0xff]  }
  0x63   :  { %v2358_v26 = vld [vmem:[#allocation5 + $0xcc] ss:$16 sps:$4 sm:$0xff]   ;;  %v2360_v27 = vld [vmem:[#allocation5 + $0xc0] ss:$16 sps:$4 sm:$0xff]   ;;  %v2361_v28 = vld [vmem:[#allocation5 + $0xc8] ss:$16 sps:$4 sm:$0xff]  }
  0x64   :  { %v2362_v29 = vld [vmem:[#allocation5 + $0xe4] ss:$16 sps:$4 sm:$0xff]   ;;  %v2364_v30 = vld [vmem:[#allocation5 + $0xec] ss:$16 sps:$4 sm:$0xff]   ;;  %v2366_v31 = vld [vmem:[#allocation5 + $0xe0] ss:$16 sps:$4 sm:$0xff]  }
  0x65   :  { %301 = vmatpush1.bf16.msra.mxu0 %v2336_v11  ;;  %344 = vmatpush1.bf16.msra.mxu1 %v2337_v12  ;;  %v2367_v32 = vld [vmem:[#allocation5 + $0xe8] ss:$16 sps:$4 sm:$0xff]   ;;  %v2371_v34 = vld [vmem:[#allocation7 + $0x4] ss:$16 sps:$4 sm:$0xff]   ;;  %v2374_v35 = vld [vmem:[#allocation7 + $0xc] ss:$16 sps:$4 sm:$0xff]  }
  0x66   :  { %302 = vmatprep.subr.bf16.mxu0 %v2338_v13  ;;  %345 = vmatprep.subr.bf16.mxu1 %v2340_v14  ;;  %v2369_v36 = vld [vmem:[#allocation7] ss:$16 sps:$4 sm:$0xff]   ;;  %v2372_v37 = vld [vmem:[#allocation7 + $0x8] ss:$16 sps:$4 sm:$0xff]   ;;  %v2377_v38 = vld [vmem:[#allocation7 + $0x24] ss:$16 sps:$4 sm:$0xff]  }
  0x67   :  { %v2380_v39 = vld [vmem:[#allocation7 + $0x2c] ss:$16 sps:$4 sm:$0xff]   ;;  %v2375_v40 = vld [vmem:[#allocation7 + $0x20] ss:$16 sps:$4 sm:$0xff]   ;;  %v2378_v41 = vld [vmem:[#allocation7 + $0x28] ss:$16 sps:$4 sm:$0xff]  }
  0x68   :  { %v2383_v42 = vld [vmem:[#allocation7 + $0x44] ss:$16 sps:$4 sm:$0xff]   ;;  %v2386_v43 = vld [vmem:[#allocation7 + $0x4c] ss:$16 sps:$4 sm:$0xff]   ;;  %v2381_v44 = vld [vmem:[#allocation7 + $0x40] ss:$16 sps:$4 sm:$0xff]  }
  0x69   :  { %303 = vmatpush1.bf16.msra.mxu0 %v2342_v15  ;;  %346 = vmatpush1.bf16.msra.mxu1 %v2343_v16  ;;  %v2384_v45 = vld [vmem:[#allocation7 + $0x48] ss:$16 sps:$4 sm:$0xff]   ;;  %v2389_v46 = vld [vmem:[#allocation7 + $0x64] ss:$16 sps:$4 sm:$0xff]   ;;  %v2392_v47 = vld [vmem:[#allocation7 + $0x6c] ss:$16 sps:$4 sm:$0xff]  }
  0x6a   :  { %304 = vmatprep.subr.bf16.mxu0 %v2344_v17  ;;  %347 = vmatprep.subr.bf16.mxu1 %v2346_v18  ;;  %v2387_v48 = vld [vmem:[#allocation7 + $0x60] ss:$16 sps:$4 sm:$0xff]   ;;  %v2390_v49 = vld [vmem:[#allocation7 + $0x68] ss:$16 sps:$4 sm:$0xff]   ;;  %v2395_v50 = vld [vmem:[#allocation7 + $0x84] ss:$16 sps:$4 sm:$0xff]  }
  0x6b   :  { %v2398_v51 = vld [vmem:[#allocation7 + $0x8c] ss:$16 sps:$4 sm:$0xff]   ;;  %v2393_v52 = vld [vmem:[#allocation7 + $0x80] ss:$16 sps:$4 sm:$0xff]   ;;  %v2396_v53 = vld [vmem:[#allocation7 + $0x88] ss:$16 sps:$4 sm:$0xff]  }
  0x6c   :  { %v2401_v54 = vld [vmem:[#allocation7 + $0xa4] ss:$16 sps:$4 sm:$0xff]   ;;  %v2404_v55 = vld [vmem:[#allocation7 + $0xac] ss:$16 sps:$4 sm:$0xff]   ;;  %v2399_v56 = vld [vmem:[#allocation7 + $0xa0] ss:$16 sps:$4 sm:$0xff]  }
  0x6d   :  { %305 = vmatpush1.bf16.msra.mxu0 %v2348_v19  ;;  %348 = vmatpush1.bf16.msra.mxu1 %v2349_v20  ;;  %v2402_v57 = vld [vmem:[#allocation7 + $0xa8] ss:$16 sps:$4 sm:$0xff]   ;;  %v2407_v58 = vld [vmem:[#allocation7 + $0xc4] ss:$16 sps:$4 sm:$0xff]   ;;  %v2410_v59 = vld [vmem:[#allocation7 + $0xcc] ss:$16 sps:$4 sm:$0xff]  }
  0x6e   :  { %306 = vmatprep.subr.bf16.mxu0 %v2350_v21  ;;  %349 = vmatprep.subr.bf16.mxu1 %v2352_v22  ;;  %v2405_v60 = vld [vmem:[#allocation7 + $0xc0] ss:$16 sps:$4 sm:$0xff]   ;;  %v2408_v61 = vld [vmem:[#allocation7 + $0xc8] ss:$16 sps:$4 sm:$0xff]   ;;  %v2413_v62 = vld [vmem:[#allocation7 + $0xe4] ss:$16 sps:$4 sm:$0xff]  }
  0x6f   :  { %v2416_v63 = vld [vmem:[#allocation7 + $0xec] ss:$16 sps:$4 sm:$0xff]   ;;  %v2411_v0 = vld [vmem:[#allocation7 + $0xe0] ss:$16 sps:$4 sm:$0xff]   ;;  %v2414_v1 = vld [vmem:[#allocation7 + $0xe8] ss:$16 sps:$4 sm:$0xff]  }
  0x70   :  { %v2419_v2 = vld [vmem:[#allocation7 + $0x104] ss:$16 sps:$4 sm:$0xff]   ;;  %v2422_v3 = vld [vmem:[#allocation7 + $0x10c] ss:$16 sps:$4 sm:$0xff]   ;;  %v2417_v4 = vld [vmem:[#allocation7 + $0x100] ss:$16 sps:$4 sm:$0xff]  }
  0x71   :  { %307 = vmatpush1.bf16.msra.mxu0 %v2354_v23  ;;  %350 = vmatpush1.bf16.msra.mxu1 %v2355_v24  ;;  %v2420_v5 = vld [vmem:[#allocation7 + $0x108] ss:$16 sps:$4 sm:$0xff]   ;;  %v2425_v6 = vld [vmem:[#allocation7 + $0x124] ss:$16 sps:$4 sm:$0xff]   ;;  %v2428_v7 = vld [vmem:[#allocation7 + $0x12c] ss:$16 sps:$4 sm:$0xff]  }
  0x72   :  { %308 = vmatprep.subr.bf16.mxu0 %v2356_v25  ;;  %351 = vmatprep.subr.bf16.mxu1 %v2358_v26  ;;  %v2423_v8 = vld [vmem:[#allocation7 + $0x120] ss:$16 sps:$4 sm:$0xff]   ;;  %v2426_v9 = vld [vmem:[#allocation7 + $0x128] ss:$16 sps:$4 sm:$0xff]   ;;  %v2431_v10 = vld [vmem:[#allocation7 + $0x144] ss:$16 sps:$4 sm:$0xff]  }
  0x73   :  { %v2434_v11 = vld [vmem:[#allocation7 + $0x14c] ss:$16 sps:$4 sm:$0xff]   ;;  %v2429_v12 = vld [vmem:[#allocation7 + $0x140] ss:$16 sps:$4 sm:$0xff]   ;;  %v2432_v13 = vld [vmem:[#allocation7 + $0x148] ss:$16 sps:$4 sm:$0xff]  }
  0x74   :  { %v2437_v14 = vld [vmem:[#allocation7 + $0x164] ss:$16 sps:$4 sm:$0xff]   ;;  %v2440_v15 = vld [vmem:[#allocation7 + $0x16c] ss:$16 sps:$4 sm:$0xff]   ;;  %v2435_v16 = vld [vmem:[#allocation7 + $0x160] ss:$16 sps:$4 sm:$0xff]  }
  0x75   :  { %309 = vmatpush1.bf16.msra.mxu0 %v2360_v27  ;;  %352 = vmatpush1.bf16.msra.mxu1 %v2361_v28  ;;  %v2438_v17 = vld [vmem:[#allocation7 + $0x168] ss:$16 sps:$4 sm:$0xff]   ;;  %v2443_v18 = vld [vmem:[#allocation7 + $0x184] ss:$16 sps:$4 sm:$0xff]   ;;  %v2446_v19 = vld [vmem:[#allocation7 + $0x18c] ss:$16 sps:$4 sm:$0xff]  }
  0x76   :  { %310 = vmatprep.subr.bf16.mxu0 %v2362_v29  ;;  %353 = vmatprep.subr.bf16.mxu1 %v2364_v30  ;;  %v2441_v20 = vld [vmem:[#allocation7 + $0x180] ss:$16 sps:$4 sm:$0xff]   ;;  %v2444_v21 = vld [vmem:[#allocation7 + $0x188] ss:$16 sps:$4 sm:$0xff]   ;;  %v2449_v22 = vld [vmem:[#allocation7 + $0x1a4] ss:$16 sps:$4 sm:$0xff]  }
  0x77   :  { %v2452_v23 = vld [vmem:[#allocation7 + $0x1ac] ss:$16 sps:$4 sm:$0xff]   ;;  %v2447_v24 = vld [vmem:[#allocation7 + $0x1a0] ss:$16 sps:$4 sm:$0xff]   ;;  %v2450_v25 = vld [vmem:[#allocation7 + $0x1a8] ss:$16 sps:$4 sm:$0xff]  }
  0x78   :  { %v2455_v26 = vld [vmem:[#allocation7 + $0x1c4] ss:$16 sps:$4 sm:$0xff]   ;;  %v2458_v27 = vld [vmem:[#allocation7 + $0x1cc] ss:$16 sps:$4 sm:$0xff]   ;;  %v2453_v28 = vld [vmem:[#allocation7 + $0x1c0] ss:$16 sps:$4 sm:$0xff]  }
  0x79   :  { %311 = vmatpush1.bf16.msra.mxu0 %v2366_v31  ;;  %354 = vmatpush1.bf16.msra.mxu1 %v2367_v32  ;;  %v2456_v29 = vld [vmem:[#allocation7 + $0x1c8] ss:$16 sps:$4 sm:$0xff]   ;;  %v2459_v30 = vld [vmem:[#allocation7 + $0x1e0] ss:$16 sps:$4 sm:$0xff]   ;;  %v2461_v31 = vld [vmem:[#allocation7 + $0x1e4] ss:$16 sps:$4 sm:$0xff]  }
  0x7a   :  { %1338 = vmatprep.subr.bf16.mxu0 %v2371_v34  ;;  %1424 = vmatprep.subr.bf16.mxu1 %v2374_v35  ;;  %v2462_v32 = vld [vmem:[#allocation7 + $0x1e8] ss:$16 sps:$4 sm:$0xff]   ;;  %v2467_v34 = vld [vmem:[#allocation7 + $0x204] ss:$16 sps:$4 sm:$0xff]   ;;  %v2470_v35 = vld [vmem:[#allocation7 + $0x20c] ss:$16 sps:$4 sm:$0xff]  }
  0x7b   :  { %s2764_s4 = smov [#allocation11]  }
  0x7c   :  { %329 = vmatmul.mubr.bf16.vlgmr.msra.gmra.mrb[0].mxu0 %v2368_v33  ;;  %372 = vmatmul.mubr.bf16.vlgmr.msra.gmra.mrb[0].mxu1 %v2368_v33  ;;  %v2464_v33 = vld [vmem:[#allocation7 + $0x1ec] ss:$16 sps:$4 sm:$0xff]   ;;  %s2047_s29 = sshll.u32 %s2764_s4, 4  ;;  %s2048_s29 = int_to_ptr.vmem [resolvable:$true] %s2047_s29 }
  0x7d   :  { %1339 = vmatpush1.bf16.msra.mxu0 %v2369_v36  ;;  %1425 = vmatpush1.bf16.msra.mxu1 %v2372_v37  ;;  %s2723_s30 = scalar_lea.vmem %s2048_s29, 256  ;;  %p2728_p13 = scmp.lt.s32.totalorder %s2048_s29, %s2048_s29 }
  0x7e   :  { %1340 = vmatprep.subr.bf16.mxu0 %v2377_v38  ;;  %1426 = vmatprep.subr.bf16.mxu1 %v2380_v39  ;;  %p2724_p12 = scmp.ne.s32.totalorder %s2048_s29, %s2723_s30  ;;  %p2729_p0 = scmp.lt.s32.totalorder %s2723_s30, %s2723_s30 }
  0x80   :  { %p2730_p1 = por %p2729_p0, %p2728_p13 }
  0x81   :  { %1341 = vmatpush1.bf16.msra.mxu0 %v2375_v40  ;;  %1427 = vmatpush1.bf16.msra.mxu1 %v2378_v41 }
  0x82   :  { %1342 = vmatprep.subr.bf16.mxu0 %v2383_v42  ;;  %1428 = vmatprep.subr.bf16.mxu1 %v2386_v43  ;;  %p2731_p2 = pnand %p2730_p1, %p2724_p12 }
  0x85   :  { %1343 = vmatpush1.bf16.msra.mxu0 %v2381_v44  ;;  %1429 = vmatpush1.bf16.msra.mxu1 %v2384_v45 }
  0x86   :  { %1344 = vmatprep.subr.bf16.mxu0 %v2389_v46  ;;  %1430 = vmatprep.subr.bf16.mxu1 %v2392_v47 }
  0x89   :  { %1345 = vmatpush1.bf16.msra.mxu0 %v2387_v48  ;;  %1431 = vmatpush1.bf16.msra.mxu1 %v2390_v49 }
  0x8a   :  { %1346 = vmatprep.subr.bf16.mxu0 %v2395_v50  ;;  %1432 = vmatprep.subr.bf16.mxu1 %v2398_v51 }
  0x8d   :  { %1347 = vmatpush1.bf16.msra.mxu0 %v2393_v52  ;;  %1433 = vmatpush1.bf16.msra.mxu1 %v2396_v53 }
  0x8e   :  { %1348 = vmatprep.subr.bf16.mxu0 %v2401_v54  ;;  %1434 = vmatprep.subr.bf16.mxu1 %v2404_v55 }
  0x91   :  { %1349 = vmatpush1.bf16.msra.mxu0 %v2399_v56  ;;  %1435 = vmatpush1.bf16.msra.mxu1 %v2402_v57 }
  0x92   :  { %1350 = vmatprep.subr.bf16.mxu0 %v2407_v58  ;;  %1436 = vmatprep.subr.bf16.mxu1 %v2410_v59 }
  0x95   :  { %1351 = vmatpush1.bf16.msra.mxu0 %v2405_v60  ;;  %1437 = vmatpush1.bf16.msra.mxu1 %v2408_v61 }
  0x96   :  { %1352 = vmatprep.subr.bf16.mxu0 %v2413_v62  ;;  %1438 = vmatprep.subr.bf16.mxu1 %v2416_v63 }
  0x99   :  { %1353 = vmatpush1.bf16.msra.mxu0 %v2411_v0  ;;  %1439 = vmatpush1.bf16.msra.mxu1 %v2414_v1 }
  0x9a   :  { %1354 = vmatprep.subr.bf16.mxu0 %v2419_v2  ;;  %1440 = vmatprep.subr.bf16.mxu1 %v2422_v3 }
  0x9d   :  { %1355 = vmatpush1.bf16.msra.mxu0 %v2417_v4  ;;  %1441 = vmatpush1.bf16.msra.mxu1 %v2420_v5 }
  0x9e   :  { %1356 = vmatprep.subr.bf16.mxu0 %v2425_v6  ;;  %1442 = vmatprep.subr.bf16.mxu1 %v2428_v7 }
  0xa1   :  { %1357 = vmatpush1.bf16.msra.mxu0 %v2423_v8  ;;  %1443 = vmatpush1.bf16.msra.mxu1 %v2426_v9 }
  0xa2   :  { %1358 = vmatprep.subr.bf16.mxu0 %v2431_v10  ;;  %1444 = vmatprep.subr.bf16.mxu1 %v2434_v11 }
  0xa5   :  { %1359 = vmatpush1.bf16.msra.mxu0 %v2429_v12  ;;  %1445 = vmatpush1.bf16.msra.mxu1 %v2432_v13 }
  0xa6   :  { %1360 = vmatprep.subr.bf16.mxu0 %v2437_v14  ;;  %1446 = vmatprep.subr.bf16.mxu1 %v2440_v15 }
  0xa9   :  { %1361 = vmatpush1.bf16.msra.mxu0 %v2435_v16  ;;  %1447 = vmatpush1.bf16.msra.mxu1 %v2438_v17 }
  0xaa   :  { %1362 = vmatprep.subr.bf16.mxu0 %v2443_v18  ;;  %1448 = vmatprep.subr.bf16.mxu1 %v2446_v19 }
  0xad   :  { %1363 = vmatpush1.bf16.msra.mxu0 %v2441_v20  ;;  %1449 = vmatpush1.bf16.msra.mxu1 %v2444_v21 }
  0xae   :  { %1364 = vmatprep.subr.bf16.mxu0 %v2449_v22  ;;  %1450 = vmatprep.subr.bf16.mxu1 %v2452_v23 }
  0xb1   :  { %1365 = vmatpush1.bf16.msra.mxu0 %v2447_v24  ;;  %1451 = vmatpush1.bf16.msra.mxu1 %v2450_v25 }
  0xb2   :  { %1366 = vmatprep.subr.bf16.mxu0 %v2455_v26  ;;  %1452 = vmatprep.subr.bf16.mxu1 %v2458_v27 }
  0xb5   :  { %1367 = vmatpush1.bf16.msra.mxu0 %v2453_v28  ;;  %1453 = vmatpush1.bf16.msra.mxu1 %v2456_v29 }
  0xb6   :  { %1368 = vmatprep.subr.bf16.mxu0 %v2461_v31  ;;  %1454 = vmatprep.subr.bf16.mxu1 %v2464_v33 }
  0xb9   :  { %1369 = vmatpush1.bf16.msra.mxu0 %v2459_v30  ;;  %1455 = vmatpush1.bf16.msra.mxu1 %v2462_v32 }
  0xba   :  { %1381 = vmatprep.subr.bf16.mxu0 %v2467_v34  ;;  %1467 = vmatprep.subr.bf16.mxu1 %v2470_v35 }
 0x14f   :  { %v330_v36 = vpop.f32.mrb[0].mxu0  ;;  %v373_v37 = vpop.f32.mrb[0].mxu1 }
 0x150   :  { %v332_v38 = vpop.f32.mrb[1].mxu0  ;;  %v375_v39 = vpop.f32.mrb[1].mxu1 }
 0x151   :  { %v334_v40 = vpop.f32.mrb[2].mxu0  ;;  %v377_v41 = vpop.f32.mrb[2].mxu1 }
 0x152   :  { %v382_v42 = vadd.f32 %v334_v40, %v330_v36  ;;  %v396_v43 = vadd.f32 %v377_v41, %v373_v37  ;;  %v336_v44 = vpop.f32.mrb[3].mxu0  ;;  %v379_v45 = vpop.f32.mrb[3].mxu1 }
 0x153   :  { %v389_v46 = vadd.f32 %v336_v44, %v332_v38  ;;  %v403_v47 = vadd.f32 %v379_v45, %v375_v39 }
 0x154   :  { %v383_v48 = vrot.slane %v382_v42, 4  ;;  %v397_v49 = vrot.slane %v396_v43, 4 }
 0x155   :  { %v390_v50 = vrot.slane %v389_v46, 4  ;;  %v404_v51 = vrot.slane %v403_v47, 4 }
 0x156   :  { %v384_v52 = vadd.f32 %v383_v48, %v382_v42  ;;  %v398_v53 = vadd.f32 %v397_v49, %v396_v43 }
 0x157   :  { %v391_v54 = vadd.f32 %v390_v50, %v389_v46  ;;  %v405_v55 = vadd.f32 %v404_v51, %v403_v47 }
 0x158   :  { %v385_v56 = vrot.slane %v384_v52, 2  ;;  %v399_v57 = vrot.slane %v398_v53, 2 }
 0x159   :  { %v392_v58 = vrot.slane %v391_v54, 2  ;;  %v406_v59 = vrot.slane %v405_v55, 2 }
 0x15a   :  { %v386_v60 = vadd.f32 %v385_v56, %v384_v52  ;;  %v400_v61 = vadd.f32 %v399_v57, %v398_v53 }
 0x15b   :  { %v393_v62 = vadd.f32 %v392_v58, %v391_v54  ;;  %v407_v63 = vadd.f32 %v406_v59, %v405_v55 }
 0x15c   :  { %v387_v0 = vrot.slane %v386_v60, 1  ;;  %v401_v1 = vrot.slane %v400_v61, 1 }
 0x15d   :  { %v394_v2 = vrot.slane %v393_v62, 1  ;;  %v408_v3 = vrot.slane %v407_v63, 1 }
 0x15e   :  { %v388_v4 = vadd.f32 %v387_v0, %v386_v60  ;;  %v402_v5 = vadd.f32 %v401_v1, %v400_v61  ;;  %v2763_v0 = vmov 1966171168  }
 0x15f   :  { %v395_v6 = vadd.f32 %v394_v2, %v393_v62  ;;  %v409_v7 = vadd.f32 %v408_v3, %v407_v63  ;;  %v477_v1 = vunpack.c.l.s4 %v2763_v0  ;;  %v479_v2 = vlaneseq  ;;  %v2474_v0 = vld [vmem:[#allocation7 + $0x228] ss:$16 sps:$4 sm:$0xff]  }
 0x160   :  { %v410_v8 = vmul.f32 0.0625, %v388_v4  ;;  %v412_v9 = vmul.f32 0.0625, %v402_v5 }
 0x161   :  { %v411_v10 = vmul.f32 0.0625, %v395_v6  ;;  %v413_v11 = vmul.f32 0.0625, %v409_v7  ;;  %v478_v3 = vunpack.c.0.s8 %v477_v1  ;;  %v480_v4 = vshrl.u32 %v479_v2, 7  ;;  %v2479_v1 = vld [vmem:[#allocation7 + $0x244] ss:$16 sps:$4 sm:$0xff]  }
 0x162   :  { %v2863_v12 = vsub.f32 %v330_v36, %v410_v8  ;;  %v2865_v13 = vsub.f32 %v334_v40, %v410_v8  ;;  %v2867_v14 = vsub.f32 %v373_v37, %v412_v9  ;;  %v2869_v15 = vsub.f32 %v377_v41, %v412_v9  ;;  %v2482_v2 = vld [vmem:[#allocation7 + $0x24c] ss:$16 sps:$4 sm:$0xff]  }
 0x163   :  { %v2871_v16 = vsub.f32 %v332_v38, %v411_v10  ;;  %v2873_v17 = vsub.f32 %v336_v44, %v411_v10  ;;  %v2875_v18 = vsub.f32 %v375_v39, %v413_v11  ;;  %v2877_v19 = vsub.f32 %v379_v45, %v413_v11 }
 0x164   :  { %v422_v20 = vmul.f32 %v2863_v12, %v2863_v12  ;;  %v426_v21 = vmul.f32 %v2865_v13, %v2865_v13  ;;  %v424_v22 = vmul.f32 %v2867_v14, %v2867_v14  ;;  %v428_v23 = vmul.f32 %v2869_v15, %v2869_v15 }
 0x165   :  { %v423_v24 = vmul.f32 %v2871_v16, %v2871_v16  ;;  %v427_v25 = vmul.f32 %v2873_v17, %v2873_v17  ;;  %v425_v26 = vmul.f32 %v2875_v18, %v2875_v18  ;;  %v429_v27 = vmul.f32 %v2877_v19, %v2877_v19 }
 0x166   :  { %v430_v28 = vadd.f32 %v426_v21, %v422_v20  ;;  %v444_v29 = vadd.f32 %v428_v23, %v424_v22  ;;  %v2895_v7 = vsub.s32 %v478_v3, %v480_v4  ;;  %v88_v23 = vld [vmem:[#allocation10] ss:$8 sm:$0xf] }
 0x167   :  { %v437_v30 = vadd.f32 %v427_v25, %v423_v24  ;;  %v451_v31 = vadd.f32 %v429_v27, %v425_v26  ;;  %v2899_v24 = vsub.s32 3, %v480_v4  ;;  %v90_v25 = vld [vmem:[#allocation10 + $0x1] ss:$8 sm:$0xf]  ;;  %v2902_v27 = vsub.s32 1, %v480_v4 }
 0x168   :  { %v431_v32 = vrot.slane %v430_v28, 4  ;;  %v445_v33 = vrot.slane %v444_v29, 4  ;;  %v2477_v3 = vld [vmem:[#allocation7 + $0x240] ss:$16 sps:$4 sm:$0xff]  }
 0x169   :  { %v438_v34 = vrot.slane %v437_v30, 4  ;;  %v452_v35 = vrot.slane %v451_v31, 4 }
 0x16a   :  { %v432_v36 = vadd.f32 %v431_v32, %v430_v28  ;;  %v446_v37 = vadd.f32 %v445_v33, %v444_v29  ;;  %v2904_v28 = vsub.s32 0, %v480_v4  ;;  %v2906_v29 = vsub.s32 2, %v480_v4  ;;  %v2480_v4 = vld [vmem:[#allocation7 + $0x248] ss:$16 sps:$4 sm:$0xff]  }
 0x16b   :  { %v439_v38 = vadd.f32 %v438_v34, %v437_v30  ;;  %v453_v39 = vadd.f32 %v452_v35, %v451_v31  ;;  %v545_v31 = vrot.slane %v90_v25, %v2899_v24  ;;  %v537_v32 = vrot.slane %v90_v25, %v2902_v27 }
 0x16c   :  { %v433_v40 = vrot.slane %v432_v36, 2  ;;  %v447_v41 = vrot.slane %v446_v37, 2 }
 0x16d   :  { %v440_v42 = vrot.slane %v439_v38, 2  ;;  %v454_v43 = vrot.slane %v453_v39, 2 }
 0x16e   :  { %v434_v44 = vadd.f32 %v433_v40, %v432_v36  ;;  %v448_v45 = vadd.f32 %v447_v41, %v446_v37  ;;  %v533_v37 = vrot.slane %v90_v25, %v2904_v28 }
 0x16f   :  { %v441_v46 = vadd.f32 %v440_v42, %v439_v38  ;;  %v455_v47 = vadd.f32 %v454_v43, %v453_v39  ;;  %v541_v38 = vrot.slane %v90_v25, %v2906_v29  ;;  %v2495_v25 = vld [vmem:[#allocation7 + $0x2a0] ss:$16 sps:$4 sm:$0xff]  }
 0x170   :  { %v435_v48 = vrot.slane %v434_v44, 1  ;;  %v449_v49 = vrot.slane %v448_v45, 1 }
 0x171   :  { %v442_v50 = vrot.slane %v441_v46, 1  ;;  %v456_v51 = vrot.slane %v455_v47, 1 }
 0x172   :  { %v436_v52 = vadd.f32 %v435_v48, %v434_v44  ;;  %v450_v53 = vadd.f32 %v449_v49, %v448_v45 }
 0x173   :  { %v443_v54 = vadd.f32 %v442_v50, %v441_v46  ;;  %v457_v55 = vadd.f32 %v456_v51, %v455_v47 }
 0x174   :  { %v458_v56 = vmul.f32 0.0625, %v436_v52  ;;  %v460_v57 = vmul.f32 0.0625, %v450_v53 }
 0x175   :  { %v459_v58 = vmul.f32 0.0625, %v443_v54  ;;  %v461_v59 = vmul.f32 0.0625, %v457_v55 }
 0x176   :  { %v462_v60 = vadd.f32 1e-05, %v458_v56  ;;  %v464_v61 = vadd.f32 1e-05, %v460_v57 }
 0x177   :  { %v463_v62 = vadd.f32 1e-05, %v459_v58  ;;  %v465_v63 = vadd.f32 1e-05, %v461_v59  ;;  %v2468_v58 = vld [vmem:[#allocation7 + $0x208] ss:$16 sps:$4 sm:$0xff]  }
 0x178   :  { %2593 = vrsqrt.f32 %v462_v60 }
 0x179   :  { %2595 = vrsqrt.f32 %v464_v61  ;;  %v2473_v61 = vld [vmem:[#allocation7 + $0x224] ss:$16 sps:$4 sm:$0xff]  }
 0x17a   :  { %2597 = vrsqrt.f32 %v463_v62  ;;  %v2476_v62 = vld [vmem:[#allocation7 + $0x22c] ss:$16 sps:$4 sm:$0xff]  }
 0x17b   :  { %2599 = vrsqrt.f32 %v465_v63  ;;  %v2471_v63 = vld [vmem:[#allocation7 + $0x220] ss:$16 sps:$4 sm:$0xff]  }
 0x182   :  { %v2594_v5 = vpop.eup %2593 }
 0x183   :  { %v2596_v6 = vpop.eup %2595 }
 0x184   :  { %v2598_v8 = vpop.eup %2597 }
 0x185   :  { %v2600_v9 = vpop.eup %2599  ;;  %v474_v10 = vcombine.low %v2594_v5, %v2598_v8  ;;  %v2485_v5 = vld [vmem:[#allocation7 + $0x264] ss:$16 sps:$4 sm:$0xff]   ;;  %v2483_v8 = vld [vmem:[#allocation7 + $0x260] ss:$16 sps:$4 sm:$0xff]  }
 0x186   :  { %v475_v11 = vcombine.low %v2596_v6, %v2600_v9  ;;  %v2488_v6 = vld [vmem:[#allocation7 + $0x26c] ss:$16 sps:$4 sm:$0xff]   ;;  %v2486_v9 = vld [vmem:[#allocation7 + $0x268] ss:$16 sps:$4 sm:$0xff]  }
 0x187   :  { %v482_v20 = vrot.slane %v474_v10, %v2895_v7  ;;  %v2491_v10 = vld [vmem:[#allocation7 + $0x284] ss:$16 sps:$4 sm:$0xff]  }
 0x188   :  { %v489_v21 = vrot.slane %v475_v11, %v2895_v7  ;;  %v2494_v11 = vld [vmem:[#allocation7 + $0x28c] ss:$16 sps:$4 sm:$0xff]  }
 0x18a   :  { %v490_v22 = vcombine.low %v482_v20, %v489_v21  ;;  %v2489_v20 = vld [vmem:[#allocation7 + $0x280] ss:$16 sps:$4 sm:$0xff]   ;;  %v2492_v21 = vld [vmem:[#allocation7 + $0x288] ss:$16 sps:$4 sm:$0xff]  }
 0x18c   :  { %v497_v26 = vrot.slane %v490_v22, %v2895_v7  ;;  %v2497_v22 = vld [vmem:[#allocation7 + $0x2a4] ss:$16 sps:$4 sm:$0xff]  }
 0x18e   :  { %v499_v30 = vmul.f32 %v497_v26, %v88_v23  ;;  %v2500_v23 = vld [vmem:[#allocation7 + $0x2ac] ss:$16 sps:$4 sm:$0xff]   ;;  %v2498_v26 = vld [vmem:[#allocation7 + $0x2a8] ss:$16 sps:$4 sm:$0xff]  }
 0x190   :  { %v516_v33 = vrot.slane %v499_v30, %v2899_v24  ;;  %v508_v34 = vrot.slane %v499_v30, %v2902_v27  ;;  %v504_v35 = vrot.slane %v499_v30, %v2904_v28  ;;  %v512_v36 = vrot.slane %v499_v30, %v2906_v29  ;;  %v2503_v30 = vld [vmem:[#allocation7 + $0x2c4] ss:$16 sps:$4 sm:$0xff]  }
 0x192   :  { %v524_v39 = vmul.f32 %v516_v33, %v2875_v18  ;;  %v528_v40 = vmul.f32 %v516_v33, %v2877_v19  ;;  %v522_v41 = vmul.f32 %v508_v34, %v2871_v16  ;;  %v526_v42 = vmul.f32 %v508_v34, %v2873_v17  ;;  %v2504_v33 = vld [vmem:[#allocation7 + $0x2c8] ss:$16 sps:$4 sm:$0xff]   ;;  %v2509_v34 = vld [vmem:[#allocation7 + $0x2e4] ss:$16 sps:$4 sm:$0xff]  }
 0x193   :  { %v521_v43 = vmul.f32 %v504_v35, %v2863_v12  ;;  %v525_v44 = vmul.f32 %v504_v35, %v2865_v13  ;;  %v523_v45 = vmul.f32 %v512_v36, %v2867_v14  ;;  %v527_v46 = vmul.f32 %v512_v36, %v2869_v15  ;;  %v2465_v14 = vld [vmem:[#allocation7 + $0x200] ss:$16 sps:$4 sm:$0xff]   ;;  %v2512_v35 = vld [vmem:[#allocation7 + $0x2ec] ss:$16 sps:$4 sm:$0xff]  }
 0x194   :  { %v557_v47 = vadd.f32 %v545_v31, %v528_v40  ;;  %v551_v48 = vadd.f32 %v537_v32, %v522_v41  ;;  %v555_v49 = vadd.f32 %v537_v32, %v526_v42  ;;  %v553_v50 = vadd.f32 %v545_v31, %v524_v39  ;;  %v2506_v31 = vld [vmem:[#allocation7 + $0x2cc] ss:$16 sps:$4 sm:$0xff]   ;;  %v2501_v32 = vld [vmem:[#allocation7 + $0x2c0] ss:$16 sps:$4 sm:$0xff]   ;;  %v2516_v41 = vld [vmem:[#allocation7 + $0x308] ss:$16 sps:$4 sm:$0xff]  }
 0x195   :  { %v550_v51 = vadd.f32 %v533_v37, %v521_v43  ;;  %v554_v18 = vadd.f32 %v533_v37, %v525_v44  ;;  %v552_v52 = vadd.f32 %v541_v38, %v523_v45  ;;  %v556_v19 = vadd.f32 %v541_v38, %v527_v46  ;;  %v2507_v36 = vld [vmem:[#allocation7 + $0x2e0] ss:$16 sps:$4 sm:$0xff]   ;;  %v2510_v37 = vld [vmem:[#allocation7 + $0x2e8] ss:$16 sps:$4 sm:$0xff]   ;;  %v2515_v38 = vld [vmem:[#allocation7 + $0x304] ss:$16 sps:$4 sm:$0xff]  }
 0x196   :  { %v559_v53 = vmax.f32 %v551_v48, 0.0  ;;  %v563_v16 = vmax.f32 %v555_v49, 0.0  ;;  %v561_v54 = vmax.f32 %v553_v50, 0.0  ;;  %v565_v17 = vmax.f32 %v557_v47, 0.0  ;;  %v2518_v39 = vld [vmem:[#allocation7 + $0x30c] ss:$16 sps:$4 sm:$0xff]  }
 0x197   :  { %v558_v55 = vmax.f32 %v550_v51, 0.0  ;;  %v562_v12 = vmax.f32 %v554_v18, 0.0  ;;  %v560_v56 = vmax.f32 %v552_v52, 0.0  ;;  %v564_v13 = vmax.f32 %v556_v19, 0.0  ;;  %v2513_v40 = vld [vmem:[#allocation7 + $0x300] ss:$16 sps:$4 sm:$0xff]  }
 0x198   :  { %v567_v57 = vpack.c.bf16 %v563_v16, %v559_v53  ;;  %v569_v15 = vpack.c.bf16 %v565_v17, %v561_v54  ;;  %v2521_v42 = vld [vmem:[#allocation7 + $0x324] ss:$16 sps:$4 sm:$0xff]   ;;  %v2524_v43 = vld [vmem:[#allocation7 + $0x32c] ss:$16 sps:$4 sm:$0xff]   ;;  %v2519_v44 = vld [vmem:[#allocation7 + $0x320] ss:$16 sps:$4 sm:$0xff]  }
 0x199   :  { %v566_v59 = vpack.c.bf16 %v562_v12, %v558_v55  ;;  %v2924_v60 = vpack.c.bf16 %v564_v13, %v560_v56  ;;  %v2522_v45 = vld [vmem:[#allocation7 + $0x328] ss:$16 sps:$4 sm:$0xff]   ;;  %v2527_v46 = vld [vmem:[#allocation7 + $0x344] ss:$16 sps:$4 sm:$0xff]   ;;  %v2530_v47 = vld [vmem:[#allocation7 + $0x34c] ss:$16 sps:$4 sm:$0xff]  }
 0x19a   :  { %1370 = vmatprep.mubr.bf16.mxu0 %v567_v57  ;;  %1456 = vmatprep.mubr.bf16.mxu1 %v567_v57  ;;  %v2525_v48 = vld [vmem:[#allocation7 + $0x340] ss:$16 sps:$4 sm:$0xff]   ;;  %v2528_v49 = vld [vmem:[#allocation7 + $0x348] ss:$16 sps:$4 sm:$0xff]   ;;  %v2533_v50 = vld [vmem:[#allocation7 + $0x364] ss:$16 sps:$4 sm:$0xff]  }
 0x19b   :  { %1371 = vmatmul.mubr.bf16.vlgmr.msra.gmra.mrb[4].mxu0 %v566_v59  ;;  %1457 = vmatmul.mubr.bf16.vlgmr.msra.gmra.mrb[4].mxu1 %v566_v59  ;;  %v2536_v51 = vld [vmem:[#allocation7 + $0x36c] ss:$16 sps:$4 sm:$0xff]   ;;  %v2531_v18 = vld [vmem:[#allocation7 + $0x360] ss:$16 sps:$4 sm:$0xff]   ;;  %v2534_v52 = vld [vmem:[#allocation7 + $0x368] ss:$16 sps:$4 sm:$0xff]  }
 0x19c   :  { %1382 = vmatpush1.bf16.msra.mxu0 %v2465_v14  ;;  %1468 = vmatpush1.bf16.msra.mxu1 %v2468_v58  ;;  %v2539_v19 = vld [vmem:[#allocation7 + $0x384] ss:$16 sps:$4 sm:$0xff]   ;;  %v2542_v53 = vld [vmem:[#allocation7 + $0x38c] ss:$16 sps:$4 sm:$0xff]   ;;  %v2537_v16 = vld [vmem:[#allocation7 + $0x380] ss:$16 sps:$4 sm:$0xff]  }
 0x19d   :  { %1413 = vmatprep.mubr.bf16.mxu0 %v569_v15  ;;  %1499 = vmatprep.mubr.bf16.mxu1 %v569_v15  ;;  %v2540_v54 = vld [vmem:[#allocation7 + $0x388] ss:$16 sps:$4 sm:$0xff]   ;;  %v2545_v17 = vld [vmem:[#allocation7 + $0x3a4] ss:$16 sps:$4 sm:$0xff]   ;;  %v2548_v55 = vld [vmem:[#allocation7 + $0x3ac] ss:$16 sps:$4 sm:$0xff]  }
 0x19e   :  { %1383 = vmatprep.subr.bf16.mxu0 %v2473_v61  ;;  %1469 = vmatprep.subr.bf16.mxu1 %v2476_v62  ;;  %v2543_v12 = vld [vmem:[#allocation7 + $0x3a0] ss:$16 sps:$4 sm:$0xff]   ;;  %v2546_v56 = vld [vmem:[#allocation7 + $0x3a8] ss:$16 sps:$4 sm:$0xff]   ;;  %v2551_v13 = vld [vmem:[#allocation7 + $0x3c4] ss:$16 sps:$4 sm:$0xff]  }
 0x19f   :  { %v2554_v57 = vld [vmem:[#allocation7 + $0x3cc] ss:$16 sps:$4 sm:$0xff]   ;;  %v2549_v14 = vld [vmem:[#allocation7 + $0x3c0] ss:$16 sps:$4 sm:$0xff]   ;;  %v2552_v58 = vld [vmem:[#allocation7 + $0x3c8] ss:$16 sps:$4 sm:$0xff]  }
 0x1a0   :  { %1384 = vmatpush1.bf16.msra.mxu0 %v2471_v63  ;;  %1470 = vmatpush1.bf16.msra.mxu1 %v2474_v0  ;;  %v2557_v15 = vld [vmem:[#allocation7 + $0x3e4] ss:$16 sps:$4 sm:$0xff]   ;;  %v2560_v59 = vld [vmem:[#allocation7 + $0x3ec] ss:$16 sps:$4 sm:$0xff]   ;;  %v2555_v61 = vld [vmem:[#allocation7 + $0x3e0] ss:$16 sps:$4 sm:$0xff]  }
 0x1a1   :  { %1385 = vmatprep.subr.bf16.mxu0 %v2479_v1  ;;  %1471 = vmatprep.subr.bf16.mxu1 %v2482_v2  ;;  %v2558_v62 = vld [vmem:[#allocation7 + $0x3e8] ss:$16 sps:$4 sm:$0xff]   ;;  %v2561_v63 = vld [vmem:[#allocation8 + $0x40] sm:$0xff]  }
 0x1a2   :  { %v2562_v0 = vld [vmem:[#allocation8 + $0xc0] sm:$0xff]  }
 0x1a3   :  { %v2563_v1 = vld [vmem:[#allocation8] sm:$0xff]  }
 0x1a4   :  { %1386 = vmatpush1.bf16.msra.mxu0 %v2477_v3  ;;  %1472 = vmatpush1.bf16.msra.mxu1 %v2480_v4  ;;  %v2564_v2 = vld [vmem:[#allocation8 + $0x80] sm:$0xff]   ;;  %v2565_v3 = vld [vmem:[#allocation8 + $0x48] sm:$0xff]  }
 0x1a5   :  { %1387 = vmatprep.subr.bf16.mxu0 %v2485_v5  ;;  %1473 = vmatprep.subr.bf16.mxu1 %v2488_v6  ;;  %v2566_v4 = vld [vmem:[#allocation8 + $0xc8] sm:$0xff]  }
 0x1a6   :  { %v2567_v5 = vld [vmem:[#allocation8 + $0x8] sm:$0xff]  }
 0x1a7   :  { %v2568_v6 = vld [vmem:[#allocation8 + $0x88] sm:$0xff]  }
 0x1a8   :  { %1388 = vmatpush1.bf16.msra.mxu0 %v2483_v8  ;;  %1474 = vmatpush1.bf16.msra.mxu1 %v2486_v9  ;;  %v2569_v8 = vld [vmem:[#allocation8 + $0x50] sm:$0xff]  }
 0x1a9   :  { %1389 = vmatprep.subr.bf16.mxu0 %v2491_v10  ;;  %1475 = vmatprep.subr.bf16.mxu1 %v2494_v11  ;;  %v2570_v9 = vld [vmem:[#allocation8 + $0xd0] sm:$0xff]   ;;  %v2573_v11 = vld [vmem:[#allocation8 + $0x58] sm:$0xff]  }
 0x1aa   :  { %v2571_v10 = vld [vmem:[#allocation8 + $0x10] sm:$0xff]  }
 0x1ac   :  { %1390 = vmatpush1.bf16.msra.mxu0 %v2489_v20  ;;  %1476 = vmatpush1.bf16.msra.mxu1 %v2492_v21  ;;  %v2574_v20 = vld [vmem:[#allocation8 + $0xd8] sm:$0xff]  }
 0x1ad   :  { %1391 = vmatprep.subr.bf16.mxu0 %v2497_v22  ;;  %1477 = vmatprep.subr.bf16.mxu1 %v2500_v23  ;;  %v2575_v21 = vld [vmem:[#allocation8 + $0x18] sm:$0xff]   ;;  %v2577_v23 = vld [vmem:[#allocation8 + $0x60] sm:$0xff]  }
 0x1ae   :  { %v2576_v22 = vld [vmem:[#allocation8 + $0x98] sm:$0xff]  }
 0x1b0   :  { %1392 = vmatpush1.bf16.msra.mxu0 %v2495_v25  ;;  %1478 = vmatpush1.bf16.msra.mxu1 %v2498_v26  ;;  %v2578_v25 = vld [vmem:[#allocation8 + $0xe0] sm:$0xff]  }
 0x1b1   :  { %1393 = vmatprep.subr.bf16.mxu0 %v2503_v30  ;;  %1479 = vmatprep.subr.bf16.mxu1 %v2506_v31  ;;  %v2579_v26 = vld [vmem:[#allocation8 + $0x20] sm:$0xff]   ;;  %v2581_v31 = vld [vmem:[#allocation8 + $0x68] sm:$0xff]  }
 0x1b2   :  { %v2580_v30 = vld [vmem:[#allocation8 + $0xa0] sm:$0xff]  }
 0x1b4   :  { %1394 = vmatpush1.bf16.msra.mxu0 %v2501_v32  ;;  %1480 = vmatpush1.bf16.msra.mxu1 %v2504_v33  ;;  %v2582_v32 = vld [vmem:[#allocation8 + $0xe8] sm:$0xff]  }
 0x1b5   :  { %1395 = vmatprep.subr.bf16.mxu0 %v2509_v34  ;;  %1481 = vmatprep.subr.bf16.mxu1 %v2512_v35  ;;  %v2583_v33 = vld [vmem:[#allocation8 + $0x28] sm:$0xff]   ;;  %v2585_v35 = vld [vmem:[#allocation8 + $0x70] sm:$0xff]  }
 0x1b6   :  { %v2584_v34 = vld [vmem:[#allocation8 + $0xa8] sm:$0xff]  }
 0x1b8   :  { %1396 = vmatpush1.bf16.msra.mxu0 %v2507_v36  ;;  %1482 = vmatpush1.bf16.msra.mxu1 %v2510_v37  ;;  %v2586_v36 = vld [vmem:[#allocation8 + $0xf0] sm:$0xff]  }
 0x1b9   :  { %1397 = vmatprep.subr.bf16.mxu0 %v2515_v38  ;;  %1483 = vmatprep.subr.bf16.mxu1 %v2518_v39  ;;  %v2587_v37 = vld [vmem:[#allocation8 + $0x30] sm:$0xff]   ;;  %v2589_v39 = vld [vmem:[#allocation8 + $0x78] sm:$0xff]  }
 0x1ba   :  { %v2588_v38 = vld [vmem:[#allocation8 + $0xb0] sm:$0xff]  }
 0x1bc   :  { %1398 = vmatpush1.bf16.msra.mxu0 %v2513_v40  ;;  %1484 = vmatpush1.bf16.msra.mxu1 %v2516_v41  ;;  %v2590_v40 = vld [vmem:[#allocation8 + $0xf8] sm:$0xff]  }
 0x1bd   :  { %1399 = vmatprep.subr.bf16.mxu0 %v2521_v42  ;;  %1485 = vmatprep.subr.bf16.mxu1 %v2524_v43  ;;  %v2591_v41 = vld [vmem:[#allocation8 + $0x38] sm:$0xff]  }
 0x1be   :  { %v2592_v42 = vld [vmem:[#allocation8 + $0xb8] sm:$0xff]  }
 0x1c0   :  { %1400 = vmatpush1.bf16.msra.mxu0 %v2519_v44  ;;  %1486 = vmatpush1.bf16.msra.mxu1 %v2522_v45 }
 0x1c1   :  { %1401 = vmatprep.subr.bf16.mxu0 %v2527_v46  ;;  %1487 = vmatprep.subr.bf16.mxu1 %v2530_v47 }
 0x1c4   :  { %1402 = vmatpush1.bf16.msra.mxu0 %v2525_v48  ;;  %1488 = vmatpush1.bf16.msra.mxu1 %v2528_v49 }
 0x1c5   :  { %1403 = vmatprep.subr.bf16.mxu0 %v2533_v50  ;;  %1489 = vmatprep.subr.bf16.mxu1 %v2536_v51 }
 0x1c8   :  { %1404 = vmatpush1.bf16.msra.mxu0 %v2531_v18  ;;  %1490 = vmatpush1.bf16.msra.mxu1 %v2534_v52 }
 0x1c9   :  { %1405 = vmatprep.subr.bf16.mxu0 %v2539_v19  ;;  %1491 = vmatprep.subr.bf16.mxu1 %v2542_v53 }
 0x1cc   :  { %1406 = vmatpush1.bf16.msra.mxu0 %v2537_v16  ;;  %1492 = vmatpush1.bf16.msra.mxu1 %v2540_v54 }
 0x1cd   :  { %1407 = vmatprep.subr.bf16.mxu0 %v2545_v17  ;;  %1493 = vmatprep.subr.bf16.mxu1 %v2548_v55 }
 0x1d0   :  { %1408 = vmatpush1.bf16.msra.mxu0 %v2543_v12  ;;  %1494 = vmatpush1.bf16.msra.mxu1 %v2546_v56 }
 0x1d1   :  { %1409 = vmatprep.subr.bf16.mxu0 %v2551_v13  ;;  %1495 = vmatprep.subr.bf16.mxu1 %v2554_v57 }
 0x1d4   :  { %1410 = vmatpush1.bf16.msra.mxu0 %v2549_v14  ;;  %1496 = vmatpush1.bf16.msra.mxu1 %v2552_v58 }
 0x1d5   :  { %1411 = vmatprep.subr.bf16.mxu0 %v2557_v15  ;;  %1497 = vmatprep.subr.bf16.mxu1 %v2560_v59 }
 0x1d8   :  { %1412 = vmatpush1.bf16.msra.mxu0 %v2555_v61  ;;  %1498 = vmatpush1.bf16.msra.mxu1 %v2558_v62 }
 0x1d9   :  { %2254 = vmatprep.subr.bf16.mxu0 %v2561_v63  ;;  %2276 = vmatprep.subr.bf16.mxu1 %v2562_v0 }
 0x1db   :  { %1414 = vmatmul.mubr.bf16.vlgmr.msra.gmra.mrb[4].mxu0 %v2924_v60  ;;  %1500 = vmatmul.mubr.bf16.vlgmr.msra.gmra.mrb[4].mxu1 %v2924_v60  ;;  %v2572_v60 = vld [vmem:[#allocation8 + $0x90] sm:$0xff]  }
 0x1dc   :  { %2255 = vmatpush3.bf16.msra.mxu0 %v2563_v1  ;;  %2277 = vmatpush3.bf16.msra.mxu1 %v2564_v2 }
 0x1dd   :  { %2256 = vmatprep.subr.bf16.mxu0 %v2565_v3  ;;  %2278 = vmatprep.subr.bf16.mxu1 %v2566_v4 }
 0x1e0   :  { %2257 = vmatpush3.bf16.msra.mxu0 %v2567_v5  ;;  %2279 = vmatpush3.bf16.msra.mxu1 %v2568_v6 }
 0x1e1   :  { %2258 = vmatprep.subr.bf16.mxu0 %v2569_v8  ;;  %2280 = vmatprep.subr.bf16.mxu1 %v2570_v9 }
 0x1e4   :  { %2259 = vmatpush3.bf16.msra.mxu0 %v2571_v10  ;;  %2281 = vmatpush3.bf16.msra.mxu1 %v2572_v60 }
 0x1e5   :  { %2260 = vmatprep.subr.bf16.mxu0 %v2573_v11  ;;  %2282 = vmatprep.subr.bf16.mxu1 %v2574_v20 }
 0x1e8   :  { %2261 = vmatpush3.bf16.msra.mxu0 %v2575_v21  ;;  %2283 = vmatpush3.bf16.msra.mxu1 %v2576_v22 }
 0x1e9   :  { %2262 = vmatprep.subr.bf16.mxu0 %v2577_v23  ;;  %2284 = vmatprep.subr.bf16.mxu1 %v2578_v25 }
 0x1ec   :  { %2263 = vmatpush3.bf16.msra.mxu0 %v2579_v26  ;;  %2285 = vmatpush3.bf16.msra.mxu1 %v2580_v30 }
 0x1ed   :  { %2264 = vmatprep.subr.bf16.mxu0 %v2581_v31  ;;  %2286 = vmatprep.subr.bf16.mxu1 %v2582_v32 }
 0x1f0   :  { %2265 = vmatpush3.bf16.msra.mxu0 %v2583_v33  ;;  %2287 = vmatpush3.bf16.msra.mxu1 %v2584_v34 }
 0x1f1   :  { %2266 = vmatprep.subr.bf16.mxu0 %v2585_v35  ;;  %2288 = vmatprep.subr.bf16.mxu1 %v2586_v36 }
 0x1f4   :  { %2267 = vmatpush3.bf16.msra.mxu0 %v2587_v37  ;;  %2289 = vmatpush3.bf16.msra.mxu1 %v2588_v38 }
 0x1f5   :  { %2268 = vmatprep.subr.bf16.mxu0 %v2589_v39  ;;  %2290 = vmatprep.subr.bf16.mxu1 %v2590_v40 }
 0x1f8   :  { %2269 = vmatpush3.bf16.msra.mxu0 %v2591_v41  ;;  %2291 = vmatpush3.bf16.msra.mxu1 %v2592_v42 }
 0x2ae   :  { %v1415_v43 = vpop.f32.mrb[4].mxu0  ;;  %v1501_v44 = vpop.f32.mrb[4].mxu1 }
 0x2af   :  { %v1417_v45 = vpop.f32.mrb[5].mxu0  ;;  %v1503_v46 = vpop.f32.mrb[5].mxu1 }
 0x2b0   :  { %v1419_v47 = vpop.f32.mrb[6].mxu0  ;;  %v1505_v48 = vpop.f32.mrb[6].mxu1 }
 0x2b1   :  { %v1510_v49 = vadd.f32 %v1419_v47, %v1415_v43  ;;  %v1524_v50 = vadd.f32 %v1505_v48, %v1501_v44  ;;  %v1421_v51 = vpop.f32.mrb[7].mxu0  ;;  %v1507_v18 = vpop.f32.mrb[7].mxu1 }
 0x2b2   :  { %v1517_v52 = vadd.f32 %v1421_v51, %v1417_v45  ;;  %v1531_v19 = vadd.f32 %v1507_v18, %v1503_v46 }
 0x2b3   :  { %v1511_v53 = vrot.slane %v1510_v49, 4  ;;  %v1525_v16 = vrot.slane %v1524_v50, 4 }
 0x2b4   :  { %v1518_v54 = vrot.slane %v1517_v52, 4  ;;  %v1532_v17 = vrot.slane %v1531_v19, 4 }
 0x2b5   :  { %v1512_v55 = vadd.f32 %v1511_v53, %v1510_v49  ;;  %v1526_v12 = vadd.f32 %v1525_v16, %v1524_v50 }
 0x2b6   :  { %v1519_v56 = vadd.f32 %v1518_v54, %v1517_v52  ;;  %v1533_v13 = vadd.f32 %v1532_v17, %v1531_v19 }
 0x2b7   :  { %v1513_v57 = vrot.slane %v1512_v55, 2  ;;  %v1527_v14 = vrot.slane %v1526_v12, 2 }
 0x2b8   :  { %v1520_v58 = vrot.slane %v1519_v56, 2  ;;  %v1534_v15 = vrot.slane %v1533_v13, 2 }
 0x2b9   :  { %v1514_v59 = vadd.f32 %v1513_v57, %v1512_v55  ;;  %v1528_v61 = vadd.f32 %v1527_v14, %v1526_v12 }
 0x2ba   :  { %v1521_v62 = vadd.f32 %v1520_v58, %v1519_v56  ;;  %v1535_v63 = vadd.f32 %v1534_v15, %v1533_v13 }
 0x2bb   :  { %v1515_v0 = vrot.slane %v1514_v59, 1  ;;  %v1529_v1 = vrot.slane %v1528_v61, 1 }
 0x2bc   :  { %v1522_v2 = vrot.slane %v1521_v62, 1  ;;  %v1536_v3 = vrot.slane %v1535_v63, 1 }
 0x2bd   :  { %v1516_v4 = vadd.f32 %v1515_v0, %v1514_v59  ;;  %v1530_v5 = vadd.f32 %v1529_v1, %v1528_v61 }
 0x2be   :  { %v1523_v6 = vadd.f32 %v1522_v2, %v1521_v62  ;;  %v1537_v8 = vadd.f32 %v1536_v3, %v1535_v63 }
 0x2bf   :  { %v1538_v9 = vmul.f32 0.0625, %v1516_v4  ;;  %v1540_v10 = vmul.f32 0.0625, %v1530_v5 }
 0x2c0   :  { %v1539_v60 = vmul.f32 0.0625, %v1523_v6  ;;  %v1541_v11 = vmul.f32 0.0625, %v1537_v8 }
 0x2c1   :  { %v2928_v20 = vsub.f32 %v1415_v43, %v1538_v9  ;;  %v2930_v21 = vsub.f32 %v1419_v47, %v1538_v9  ;;  %v2932_v22 = vsub.f32 %v1501_v44, %v1540_v10  ;;  %v2934_v23 = vsub.f32 %v1505_v48, %v1540_v10 }
 0x2c2   :  { %v2936_v25 = vsub.f32 %v1417_v45, %v1539_v60  ;;  %v2938_v26 = vsub.f32 %v1421_v51, %v1539_v60  ;;  %v2940_v30 = vsub.f32 %v1503_v46, %v1541_v11  ;;  %v2942_v31 = vsub.f32 %v1507_v18, %v1541_v11 }
 0x2c3   :  { %v1550_v32 = vmul.f32 %v2928_v20, %v2928_v20  ;;  %v1554_v33 = vmul.f32 %v2930_v21, %v2930_v21  ;;  %v1552_v34 = vmul.f32 %v2932_v22, %v2932_v22  ;;  %v1556_v35 = vmul.f32 %v2934_v23, %v2934_v23 }
 0x2c4   :  { %v1551_v36 = vmul.f32 %v2936_v25, %v2936_v25  ;;  %v1555_v37 = vmul.f32 %v2938_v26, %v2938_v26  ;;  %v1553_v38 = vmul.f32 %v2940_v30, %v2940_v30  ;;  %v1557_v39 = vmul.f32 %v2942_v31, %v2942_v31 }
 0x2c5   :  { %v1558_v40 = vadd.f32 %v1554_v33, %v1550_v32  ;;  %v1572_v41 = vadd.f32 %v1556_v35, %v1552_v34  ;;  %v92_v34 = vld [vmem:[#allocation10 + $0x2] ss:$8 sm:$0xf]  ;;  %v94_v35 = vld [vmem:[#allocation10 + $0x3] ss:$8 sm:$0xf] }
 0x2c6   :  { %v1565_v42 = vadd.f32 %v1555_v37, %v1551_v36  ;;  %v1579_v43 = vadd.f32 %v1557_v39, %v1553_v38  ;;  %v1673_v38 = vrot.slane %v94_v35, %v2899_v24  ;;  %v1665_v39 = vrot.slane %v94_v35, %v2902_v27 }
 0x2c7   :  { %v1559_v44 = vrot.slane %v1558_v40, 4  ;;  %v1573_v45 = vrot.slane %v1572_v41, 4 }
 0x2c8   :  { %v1566_v46 = vrot.slane %v1565_v42, 4  ;;  %v1580_v47 = vrot.slane %v1579_v43, 4 }
 0x2c9   :  { %v1560_v48 = vadd.f32 %v1559_v44, %v1558_v40  ;;  %v1574_v49 = vadd.f32 %v1573_v45, %v1572_v41  ;;  %v1661_v44 = vrot.slane %v94_v35, %v2904_v28  ;;  %v1669_v45 = vrot.slane %v94_v35, %v2906_v29 }
 0x2ca   :  { %v1567_v50 = vadd.f32 %v1566_v46, %v1565_v42  ;;  %v1581_v51 = vadd.f32 %v1580_v47, %v1579_v43 }
 0x2cb   :  { %v1561_v18 = vrot.slane %v1560_v48, 2  ;;  %v1575_v52 = vrot.slane %v1574_v49, 2 }
 0x2cc   :  { %v1568_v19 = vrot.slane %v1567_v50, 2  ;;  %v1582_v53 = vrot.slane %v1581_v51, 2 }
 0x2cd   :  { %v1562_v16 = vadd.f32 %v1561_v18, %v1560_v48  ;;  %v1576_v54 = vadd.f32 %v1575_v52, %v1574_v49 }
 0x2ce   :  { %v1569_v17 = vadd.f32 %v1568_v19, %v1567_v50  ;;  %v1583_v55 = vadd.f32 %v1582_v53, %v1581_v51 }
 0x2cf   :  { %v1563_v12 = vrot.slane %v1562_v16, 1  ;;  %v1577_v56 = vrot.slane %v1576_v54, 1 }
 0x2d0   :  { %v1570_v13 = vrot.slane %v1569_v17, 1  ;;  %v1584_v57 = vrot.slane %v1583_v55, 1 }
 0x2d1   :  { %v1564_v14 = vadd.f32 %v1563_v12, %v1562_v16  ;;  %v1578_v58 = vadd.f32 %v1577_v56, %v1576_v54 }
 0x2d2   :  { %v1571_v15 = vadd.f32 %v1570_v13, %v1569_v17  ;;  %v1585_v59 = vadd.f32 %v1584_v57, %v1583_v55  ;;  %v95_v57 = vld [vmem:[#allocation10 + $0x4] ss:$0 sm:$0xff] }
 0x2d3   :  { %v1586_v61 = vmul.f32 0.0625, %v1564_v14  ;;  %v1588_v62 = vmul.f32 0.0625, %v1578_v58 }
 0x2d4   :  { %v1587_v63 = vmul.f32 0.0625, %v1571_v15  ;;  %v1589_v0 = vmul.f32 0.0625, %v1585_v59 }
 0x2d5   :  { %v1590_v1 = vadd.f32 1e-05, %v1586_v61  ;;  %v1592_v2 = vadd.f32 1e-05, %v1588_v62 }
 0x2d6   :  { %v1591_v3 = vadd.f32 1e-05, %v1587_v63  ;;  %v1593_v4 = vadd.f32 1e-05, %v1589_v0 }
 0x2d7   :  { %2601 = vrsqrt.f32 %v1590_v1 }
 0x2d8   :  { %2603 = vrsqrt.f32 %v1592_v2 }
 0x2d9   :  { %2605 = vrsqrt.f32 %v1591_v3 }
 0x2da   :  { %2607 = vrsqrt.f32 %v1593_v4 }
 0x2e1   :  { %v2602_v5 = vpop.eup %2601 }
 0x2e2   :  { %v2604_v6 = vpop.eup %2603 }
 0x2e3   :  { %v2606_v8 = vpop.eup %2605 }
 0x2e4   :  { %v2608_v9 = vpop.eup %2607  ;;  %v1602_v10 = vcombine.low %v2602_v5, %v2606_v8 }
 0x2e5   :  { %v1603_v60 = vcombine.low %v2604_v6, %v2608_v9 }
 0x2e6   :  { %v1610_v11 = vrot.slane %v1602_v10, %v2895_v7 }
 0x2e7   :  { %v1617_v32 = vrot.slane %v1603_v60, %v2895_v7 }
 0x2e9   :  { %v1618_v33 = vcombine.low %v1610_v11, %v1617_v32 }
 0x2eb   :  { %v1625_v36 = vrot.slane %v1618_v33, %v2895_v7 }
 0x2ed   :  { %v1627_v37 = vmul.f32 %v1625_v36, %v92_v34 }
 0x2ef   :  { %v1644_v40 = vrot.slane %v1627_v37, %v2899_v24  ;;  %v1636_v41 = vrot.slane %v1627_v37, %v2902_v27  ;;  %v1632_v42 = vrot.slane %v1627_v37, %v2904_v28  ;;  %v1640_v43 = vrot.slane %v1627_v37, %v2906_v29 }
 0x2f1   :  { %v1652_v46 = vmul.f32 %v1644_v40, %v2940_v30  ;;  %v1656_v7 = vmul.f32 %v1644_v40, %v2942_v31  ;;  %v1650_v47 = vmul.f32 %v1636_v41, %v2936_v25  ;;  %v1654_v48 = vmul.f32 %v1636_v41, %v2938_v26 }
 0x2f2   :  { %v1649_v24 = vmul.f32 %v1632_v42, %v2928_v20  ;;  %v1653_v27 = vmul.f32 %v1632_v42, %v2930_v21  ;;  %v1651_v49 = vmul.f32 %v1640_v43, %v2932_v22  ;;  %v1655_v50 = vmul.f32 %v1640_v43, %v2934_v23 }
 0x2f3   :  { %v1685_v51 = vadd.f32 %v1673_v38, %v1656_v7  ;;  %v1679_v28 = vadd.f32 %v1665_v39, %v1650_v47  ;;  %v1683_v18 = vadd.f32 %v1665_v39, %v1654_v48  ;;  %v1681_v29 = vadd.f32 %v1673_v38, %v1652_v46 }
 0x2f4   :  { %v1678_v52 = vadd.f32 %v1661_v44, %v1649_v24  ;;  %v1682_v30 = vadd.f32 %v1661_v44, %v1653_v27  ;;  %v1680_v19 = vadd.f32 %v1669_v45, %v1651_v49  ;;  %v1684_v31 = vadd.f32 %v1669_v45, %v1655_v50 }
 0x2f5   :  { %v1687_v53 = vmax.f32 %v1679_v28, 0.0  ;;  %v1691_v25 = vmax.f32 %v1683_v18, 0.0  ;;  %v1689_v16 = vmax.f32 %v1681_v29, 0.0  ;;  %v1693_v26 = vmax.f32 %v1685_v51, 0.0 }
 0x2f6   :  { %v1686_v54 = vmax.f32 %v1678_v52, 0.0  ;;  %v1690_v20 = vmax.f32 %v1682_v30, 0.0  ;;  %v1688_v17 = vmax.f32 %v1680_v19, 0.0  ;;  %v1692_v21 = vmax.f32 %v1684_v31, 0.0 }
 0x2f7   :  { %v1695_v55 = vpack.c.bf16 %v1691_v25, %v1687_v53  ;;  %v1697_v22 = vpack.c.bf16 %v1693_v26, %v1689_v16 }
 0x2f8   :  { %v1694_v12 = vpack.c.bf16 %v1690_v20, %v1686_v54  ;;  %v1696_v23 = vpack.c.bf16 %v1692_v21, %v1688_v17 }
 0x2f9   :  { %1986 = vmatprep.mubr.bf16.mxu0 %v1695_v55  ;;  %2027 = vmatprep.mubr.bf16.mxu1 %v1697_v22 }
 0x2fa   :  { %1987 = vmatmul.mubr.bf16.vlgmr.msra.gmra.mrb[8].mxu0 %v1694_v12  ;;  %2028 = vmatmul.mubr.bf16.vlgmr.msra.gmra.mrb[8].mxu1 %v1696_v23 }
 0x3cd   :  { %v2270_v56 = vpop.f32.mrb[8].mxu0  ;;  %v2292_v13 = vpop.f32.mrb[8].mxu1 }
 0x3ce   :  { %v2271_v14 = vpop.f32.mrb[9].mxu0  ;;  %v2293_v58 = vpop.f32.mrb[9].mxu1 }
 0x3cf   :  { %v2272_v15 = vadd.f32 %v2271_v14, %v2270_v56  ;;  %v2294_v59 = vadd.f32 %v2293_v58, %v2292_v13  ;;  %v2273_v61 = vpop.f32.mrb[10].mxu0  ;;  %v2295_v62 = vpop.f32.mrb[10].mxu1 }
 0x3d0   :  { %v2274_v63 = vpop.f32.mrb[11].mxu0  ;;  %v2296_v0 = vpop.f32.mrb[11].mxu1 }
 0x3d1   :  { %v1989_v1 = vadd.f32 %v2272_v15, %v95_v57  ;;  %v2275_v2 = vadd.f32 %v2274_v63, %v2273_v61  ;;  %v2297_v3 = vadd.f32 %v2296_v0, %v2295_v62 }
 0x3d3   :  { %v2030_v4 = vadd.f32 %v2294_v59, %v1989_v1  ;;  %v1992_v5 = vadd.f32 %v2275_v2, %v95_v57 }
 0x3d5   :  { %2609 = vtanh.f32 %v2030_v4  ;;  %v2033_v6 = vadd.f32 %v2297_v3, %v1992_v5 }
 0x3d7   :  { %2611 = vtanh.f32 %v2033_v6 }
 0x3df   :  { %v2610_v8 = vpop.eup %2609 }
 0x3e0   :  { %v2038_v9 = vmul.f32 2.0, %v2610_v8 }
 0x3e1   :  { %v2612_v10 = vpop.eup %2611 }
 0x3e2   :  { %2040 = vst [vmem:[#allocation11] sm:$0xff] %v2038_v9  ;;  %v2039_v60 = vmul.f32 2.0, %v2612_v10 }
 0x3e4   :  { %2041 = vst [vmem:[#allocation11 + $0x8] sm:$0xff] %v2039_v60 }
 0x3e5   :  { %2734 = shalt.err (!%p2731_p2)
}
 0x3e6   :  { %s2735_s7 = scalar_lea.hbm %s2996_s5, 256 }
 0x3e7   :  { %p2736_p3 = scmp.ne.s32.totalorder %s2996_s5, %s2735_s7  ;;  %p2739_p4 = scmp.lt.u32.totalorder %s2735_s7, %s2996_s5 }
 0x3e9   :  { %p2741_p5 = pnand %p2739_p4, %p2736_p3 }
 0x3eb   :  { %2744 = shalt.err (!%p2741_p5)
}
 0x3ec   :  { %s2765_s13 = smov 128   ;;  %s2766_s14 = smov 8  }
 0x3ed   :  { %2053 = dma.vmem_to_hbm [thread:$0]  %s2048_s29, 256, %s2996_s5, [#allocation4], %s2765_s13, %s2765_s13, %s2766_s14  }
 0x3ee   :  { %2751 = dma.done.wait [#allocation4], 256  }
 0x3ef   :  { %2752 = vsyncadd [#allocation4], 4294967040 }
 0x3f0   :  { %2057 = vsyncpa [#allocation3], 1 }
 0x3f1   :  { %2058 = vsyncpa [#allocation6], 1 }
 0x3f2   :  { %2059 = vsyncpa [#allocation9], 1 }
 0x3f3   :  { %2060 = vsyncpa [#allocation4], 1 }

</bundles_post_ra>
